<compile_context>
chip_gen: v7x
topology: tpu7x:2x2x1
jax: 0.10.0
libtpu: 0.0.40
codegen_flags: <defaults>
</compile_context>

<pallas_src>
import jax
import jax.numpy as jnp
from jax.experimental import pallas as pl

# ---------------------------------------------------------------------------
# Static shape configuration (synthetic backbone)
# ---------------------------------------------------------------------------
CIN = 3
K_LOG = 9 * CIN          # 27  (3x3 conv taps * channels)
K_PAD = 128              # contraction dim padded lane-dense
CMID = 32                # logical conv channels
CMID_PAD = 128           # padded lane-dense conv channels
HEAD_PAD = 128           # per-encoder padded head width in the fused kernel
DECA_OUT = 86
EXP_OUT = 100
IDENT_DIM = 512          # ArcFace-style identity code (already lane-dense)
MAP_HID = 128
SHAPE_OUT = 300
SHAPE_PAD = 384          # 300 padded to a multiple of 128

_DECA_CODE_DICT = {'texcode': 50, 'jawpose': 3, 'globalpose': 3,
                   'cam': 3, 'lightcode': 27}     # sums to 86


# ---------------------------------------------------------------------------
# Pallas kernels
# ---------------------------------------------------------------------------

def _deca_exp_kernel(p_ref, cw_ref, cb_ref, pool_ref, fw_ref, fb_ref, out_ref):
    """Fused deca(86) + exp(100) encoders over the same warped-image patches.

    p_ref   : (B*HW, K_PAD)          bf16 im2col patches (whole batch)
    cw_ref  : (K_PAD, 2*CMID_PAD)    bf16 concatenated conv weights
    cb_ref  : (1, 2*CMID_PAD)        f32 conv bias
    pool_ref: (B, B*HW)              f32 block-diagonal (1/HW) pooling matrix
    fw_ref  : (2*CMID_PAD, 2*HEAD_PAD) f32 block-diagonal fc head
    fb_ref  : (1, 2*HEAD_PAD)        f32 fc bias
    out_ref : (B, 2*HEAD_PAD)        f32 [deca code | exp code] (padded)
    """
    feat = jnp.dot(p_ref[...], cw_ref[...], preferred_element_type=jnp.float32)
    feat = jnp.maximum(feat + cb_ref[...], 0.0)                    # (B*HW, 256)
    # Global-average-pool on the MXU (block-diagonal averaging matmul).
    pooled = jnp.dot(pool_ref[...], feat,
                     preferred_element_type=jnp.float32)           # (B, 256)
    code = jnp.dot(pooled, fw_ref[...],
                   preferred_element_type=jnp.float32) + fb_ref[...]
    out_ref[...] = code.astype(out_ref.dtype)


def _mica_kernel(p_ref, cw_ref, cb_ref, pool_ref, fw_ref, fb_ref,
                 w1_ref, b1_ref, w2_ref, b2_ref, out_ref):
    """MICA backbone + mapping MLP fused: patches -> shapecode (padded 384).

    Backbone: conv(as matmul)+ReLU -> MXU pooling -> fc head -> identity(512).
    Mapping : l2-normalize -> (512->128) ReLU -> (128->384 padded) shapecode.
    """
    feat = jnp.dot(p_ref[...], cw_ref[...], preferred_element_type=jnp.float32)
    feat = jnp.maximum(feat + cb_ref[...], 0.0)                    # (B*HW, 128)
    pooled = jnp.dot(pool_ref[...], feat,
                     preferred_element_type=jnp.float32)           # (B, 128)
    ident = jnp.dot(pooled, fw_ref[...],
                    preferred_element_type=jnp.float32) + fb_ref[...]  # (B, 512)
    # l2-normalize identity code (PyTorch F.normalize uses eps=1e-12 clamp;
    # rsqrt(sum+1e-8) is numerically equivalent here).
    x = ident * jax.lax.rsqrt(jnp.sum(ident * ident, axis=-1, keepdims=True)
                              + 1e-8)
    h = jnp.dot(x, w1_ref[...], preferred_element_type=jnp.float32) + b1_ref[...]
    h = jnp.maximum(h, 0.0)                                        # (B, 128)
    out = jnp.dot(h, w2_ref[...],
                  preferred_element_type=jnp.float32) + b2_ref[...]  # (B, 384)
    out_ref[...] = out.astype(out_ref.dtype)


# ---------------------------------------------------------------------------
# pallas_call wrappers (single invocation, whole batch, whole-array VMEM blocks)
# ---------------------------------------------------------------------------

def run_deca_exp(patches, pool, p):
    batch = pool.shape[0]
    return pl.pallas_call(
        _deca_exp_kernel,
        out_shape=jax.ShapeDtypeStruct((batch, 2 * HEAD_PAD), jnp.float32),
    )(patches, p['conv_w'], p['conv_b'], pool, p['fc_w'], p['fc_b'])


def run_mica(patches, pool, p):
    batch = pool.shape[0]
    return pl.pallas_call(
        _mica_kernel,
        out_shape=jax.ShapeDtypeStruct((batch, SHAPE_PAD), jnp.float32),
    )(patches, p['conv_w'], p['conv_b'], pool, p['fc_w'], p['fc_b'],
      p['w1'], p['b1'], p['w2'], p['b2'])


# ---------------------------------------------------------------------------
# Glue: im2col (zero-padded lane-dense), parameter init/packing, forward
# ---------------------------------------------------------------------------

def im2col_3x3_padded(x_nhwc):
    """3x3, stride 1, pad 1 patches. (B,H,W,C) -> bf16 (B*H*W, K_PAD)."""
    b, h, w, c = x_nhwc.shape
    xp = jnp.pad(x_nhwc, ((0, 0), (1, 1), (1, 1), (0, 0)))
    cols = [xp[:, dy:dy + h, dx:dx + w, :] for dy in range(3) for dx in range(3)]
    patches = jnp.stack(cols, axis=3).reshape(b * h * w, 9 * c)    # (BHW, 27)
    patches = jnp.pad(patches, ((0, 0), (0, K_PAD - 9 * c)))       # lane-dense K
    return patches.astype(jnp.bfloat16)


def _pad_to(x, shape):
    return jnp.pad(x, [(0, s - d) for d, s in zip(x.shape, shape)])


def init_params(key):
    """Build synthetic backbone params, pre-padded/fused for the two kernels."""
    def dense(kk, shape, scale=0.05):
        return (scale * jax.random.normal(kk, shape)).astype(jnp.float32)

    ks = jax.random.split(key, 8)

    def enc(k1, k2, outsize):
        return {'conv_w': dense(k1, (K_LOG, CMID)),
                'fc_w': dense(k2, (CMID, outsize))}

    deca = enc(ks[0], ks[1], DECA_OUT)
    exp = enc(ks[2], ks[3], EXP_OUT)
    mica = enc(ks[4], ks[5], IDENT_DIM)
    w1 = dense(ks[6], (IDENT_DIM, MAP_HID))
    w2 = dense(ks[7], (MAP_HID, SHAPE_OUT))

    # ---- fused deca + exp: concat conv channels, block-diagonal fc head ----
    cw = jnp.concatenate([_pad_to(deca['conv_w'], (K_PAD, CMID_PAD)),
                          _pad_to(exp['conv_w'], (K_PAD, CMID_PAD))], axis=1)
    fw = jnp.zeros((2 * CMID_PAD, 2 * HEAD_PAD), jnp.float32)
    fw = fw.at[:CMID, :DECA_OUT].set(deca['fc_w'])
    fw = fw.at[CMID_PAD:CMID_PAD + CMID,
               HEAD_PAD:HEAD_PAD + EXP_OUT].set(exp['fc_w'])
    deca_exp_params = {
        'conv_w': cw.astype(jnp.bfloat16),
        'conv_b': jnp.zeros((1, 2 * CMID_PAD), jnp.float32),
        'fc_w': fw,
        'fc_b': jnp.zeros((1, 2 * HEAD_PAD), jnp.float32),
    }

    # ---- MICA backbone + mapping MLP (fused into one kernel) ----
    mica_params = {
        'conv_w': _pad_to(mica['conv_w'], (K_PAD, CMID_PAD)).astype(jnp.bfloat16),
        'conv_b': jnp.zeros((1, CMID_PAD), jnp.float32),
        'fc_w': _pad_to(mica['fc_w'], (CMID_PAD, IDENT_DIM)),
        'fc_b': jnp.zeros((1, IDENT_DIM), jnp.float32),
        'w1': w1,
        'b1': jnp.zeros((1, MAP_HID), jnp.float32),
        'w2': _pad_to(w2, (MAP_HID, SHAPE_PAD)),
        'b2': jnp.zeros((1, SHAPE_PAD), jnp.float32),
    }
    return {'deca_exp': deca_exp_params, 'mica': mica_params}


def emica_forward(warped_image, mica_image, params):
    """EmicaEncoder.forward. Inputs are NCHW float images (like PyTorch)."""
    wi = jnp.transpose(warped_image, (0, 2, 3, 1)).astype(jnp.float32)
    mi = jnp.transpose(mica_image, (0, 2, 3, 1)).astype(jnp.float32)
    b, h, w, _ = wi.shape
    hw = h * w

    # TODO(synk): im2col weight-flattening order (tap, channel) must match the
    # real PyTorch (Cout, Cin, kh, kw) permutation once the checkpoint exists.
    w_patches = im2col_3x3_padded(wi)
    m_patches = im2col_3x3_padded(mi)

    # Block-diagonal average-pooling matrix: pool[i, j] = 1/HW iff row j
    # belongs to batch element i.
    pool = jnp.repeat(jnp.eye(b, dtype=jnp.float32), hw, axis=1) * (1.0 / hw)

    # deca_encoder.encode + expression_encoder.encode (same warped image,
    # one fused pallas_call). Output lanes: [0:86]=deca, [128:228]=exp.
    fused = run_deca_exp(w_patches, pool, params['deca_exp'])
    deca_code = fused[:, :DECA_OUT]
    exp_code = fused[:, HEAD_PAD:HEAD_PAD + EXP_OUT]

    results = {}
    start = 0
    for key, dim in _DECA_CODE_DICT.items():
        results[key] = deca_code[..., start:start + dim]
        start += dim

    # mica_encoder.encode: backbone + mapping MLP fused -> shapecode.
    shapecode_pad = run_mica(m_patches, pool, params['mica'])
    results['shapecode'] = shapecode_pad[:, :SHAPE_OUT]
    results['expcode'] = exp_code
    return results


# ---------------------------------------------------------------------------
# Main
# ---------------------------------------------------------------------------

if __name__ == "__main__":
    key = jax.random.PRNGKey(0)
    kp, kw, km = jax.random.split(key, 3)

    params = init_params(kp)

    B, C, H, W = 2, 3, 16, 16
    warped_image = jax.random.normal(kw, (B, C, H, W), jnp.float32)
    mica_image = jax.random.normal(km, (B, C, H, W), jnp.float32)

    fwd = jax.jit(lambda wrp, mic: emica_forward(wrp, mic, params))
    out = fwd(warped_image, mica_image)
    out = jax.block_until_ready(out)

    expected = {'texcode': (B, 50), 'jawpose': (B, 3), 'globalpose': (B, 3),
                'cam': (B, 3), 'lightcode': (B, 27),
                'shapecode': (B, 300), 'expcode': (B, 100)}
    for name, shp in expected.items():
        assert out[name].shape == shp, (name, out[name].shape, shp)
        assert out[name].dtype == jnp.float32, (name, out[name].dtype)

    print("KERNEL_OK")
</pallas_src>

<mosaic_0001>
module attributes {stable_mosaic.version = 11 : i64} {
  func.func @_deca_exp_kernel(%arg0: memref<512x128xbf16, #tpu.memory_space<vmem>>, %arg1: memref<128x256xbf16, #tpu.memory_space<vmem>>, %arg2: memref<1x256xf32, #tpu.memory_space<vmem>>, %arg3: memref<2x512xf32, #tpu.memory_space<vmem>>, %arg4: memref<256x256xf32, #tpu.memory_space<vmem>>, %arg5: memref<1x256xf32, #tpu.memory_space<vmem>>, %arg6: memref<2x256xf32, #tpu.memory_space<vmem>>) attributes {dimension_semantics = [], scalar_prefetch = 0 : i64, scratch_operands = 0 : i64, tpu.core_type = #tpu.core_type<tc>} {
    %c0 = arith.constant 0 : index
    %c0_0 = arith.constant 0 : index
    %0 = vector.load %arg0[%c0, %c0_0] : memref<512x128xbf16, #tpu.memory_space<vmem>>, vector<512x128xbf16>
    %c0_1 = arith.constant 0 : index
    %c0_2 = arith.constant 0 : index
    %1 = vector.load %arg1[%c0_1, %c0_2] : memref<128x256xbf16, #tpu.memory_space<vmem>>, vector<128x256xbf16>
    %cst = arith.constant dense<0.000000e+00> : vector<512x256xf32>
    %2 = tpu.matmul %0, %1, %cst {dimension_numbers = #tpu.dot_dimension_numbers<[1], [0], [0], [1], [0, 0, 1, 1], [], []>} : vector<512x128xbf16>, vector<128x256xbf16>, vector<512x256xf32> -> vector<512x256xf32>
    %c0_3 = arith.constant 0 : index
    %c0_4 = arith.constant 0 : index
    %3 = vector.load %arg2[%c0_3, %c0_4] : memref<1x256xf32, #tpu.memory_space<vmem>>, vector<1x256xf32>
    %4 = vector.broadcast %3 : vector<1x256xf32> to vector<512x256xf32>
    %5 = arith.addf %2, %4 : vector<512x256xf32>
    %cst_5 = arith.constant 0.000000e+00 : f32
    %6 = vector.broadcast %cst_5 : f32 to vector<512x256xf32>
    %7 = arith.maximumf %5, %6 : vector<512x256xf32>
    %c0_6 = arith.constant 0 : index
    %c0_7 = arith.constant 0 : index
    %8 = vector.load %arg3[%c0_6, %c0_7] : memref<2x512xf32, #tpu.memory_space<vmem>>, vector<2x512xf32>
    %cst_8 = arith.constant dense<0.000000e+00> : vector<2x256xf32>
    %9 = tpu.matmul %8, %7, %cst_8 {dimension_numbers = #tpu.dot_dimension_numbers<[1], [0], [0], [1], [0, 0, 1, 1], [], []>} : vector<2x512xf32>, vector<512x256xf32>, vector<2x256xf32> -> vector<2x256xf32>
    %c0_9 = arith.constant 0 : index
    %c0_10 = arith.constant 0 : index
    %10 = vector.load %arg4[%c0_9, %c0_10] : memref<256x256xf32, #tpu.memory_space<vmem>>, vector<256x256xf32>
    %cst_11 = arith.constant dense<0.000000e+00> : vector<2x256xf32>
    %11 = tpu.matmul %9, %10, %cst_11 {dimension_numbers = #tpu.dot_dimension_numbers<[1], [0], [0], [1], [0, 0, 1, 1], [], []>} : vector<2x256xf32>, vector<256x256xf32>, vector<2x256xf32> -> vector<2x256xf32>
    %c0_12 = arith.constant 0 : index
    %c0_13 = arith.constant 0 : index
    %12 = vector.load %arg5[%c0_12, %c0_13] : memref<1x256xf32, #tpu.memory_space<vmem>>, vector<1x256xf32>
    %13 = vector.broadcast %12 : vector<1x256xf32> to vector<2x256xf32>
    %14 = arith.addf %11, %13 : vector<2x256xf32>
    %c0_14 = arith.constant 0 : index
    %c0_15 = arith.constant 0 : index
    %15 = vector.load %arg6[%c0_14, %c0_15] : memref<2x256xf32, #tpu.memory_space<vmem>>, vector<2x256xf32>
    tpu.vector_store %arg6[%c0_14, %c0_15], %14 {strides = array<i32>} : memref<2x256xf32, #tpu.memory_space<vmem>>, vector<2x256xf32>,
    return
  }
}

module attributes {stable_mosaic.version = 11 : i64} {
  func.func @_mica_kernel(%arg0: memref<512x128xbf16, #tpu.memory_space<vmem>>, %arg1: memref<128x128xbf16, #tpu.memory_space<vmem>>, %arg2: memref<1x128xf32, #tpu.memory_space<vmem>>, %arg3: memref<2x512xf32, #tpu.memory_space<vmem>>, %arg4: memref<128x512xf32, #tpu.memory_space<vmem>>, %arg5: memref<1x512xf32, #tpu.memory_space<vmem>>, %arg6: memref<512x128xf32, #tpu.memory_space<vmem>>, %arg7: memref<1x128xf32, #tpu.memory_space<vmem>>, %arg8: memref<128x384xf32, #tpu.memory_space<vmem>>, %arg9: memref<1x384xf32, #tpu.memory_space<vmem>>, %arg10: memref<2x384xf32, #tpu.memory_space<vmem>>) attributes {dimension_semantics = [], scalar_prefetch = 0 : i64, scratch_operands = 0 : i64, tpu.core_type = #tpu.core_type<tc>} {
    %c0 = arith.constant 0 : index
    %c0_0 = arith.constant 0 : index
    %0 = vector.load %arg0[%c0, %c0_0] : memref<512x128xbf16, #tpu.memory_space<vmem>>, vector<512x128xbf16>
    %c0_1 = arith.constant 0 : index
    %c0_2 = arith.constant 0 : index
    %1 = vector.load %arg1[%c0_1, %c0_2] : memref<128x128xbf16, #tpu.memory_space<vmem>>, vector<128x128xbf16>
    %cst = arith.constant dense<0.000000e+00> : vector<512x128xf32>
    %2 = tpu.matmul %0, %1, %cst {dimension_numbers = #tpu.dot_dimension_numbers<[1], [0], [0], [1], [0, 0, 1, 1], [], []>} : vector<512x128xbf16>, vector<128x128xbf16>, vector<512x128xf32> -> vector<512x128xf32>
    %c0_3 = arith.constant 0 : index
    %c0_4 = arith.constant 0 : index
    %3 = vector.load %arg2[%c0_3, %c0_4] : memref<1x128xf32, #tpu.memory_space<vmem>>, vector<1x128xf32>
    %4 = vector.broadcast %3 : vector<1x128xf32> to vector<512x128xf32>
    %5 = arith.addf %2, %4 : vector<512x128xf32>
    %cst_5 = arith.constant 0.000000e+00 : f32
    %6 = vector.broadcast %cst_5 : f32 to vector<512x128xf32>
    %7 = arith.maximumf %5, %6 : vector<512x128xf32>
    %c0_6 = arith.constant 0 : index
    %c0_7 = arith.constant 0 : index
    %8 = vector.load %arg3[%c0_6, %c0_7] : memref<2x512xf32, #tpu.memory_space<vmem>>, vector<2x512xf32>
    %cst_8 = arith.constant dense<0.000000e+00> : vector<2x128xf32>
    %9 = tpu.matmul %8, %7, %cst_8 {dimension_numbers = #tpu.dot_dimension_numbers<[1], [0], [0], [1], [0, 0, 1, 1], [], []>} : vector<2x512xf32>, vector<512x128xf32>, vector<2x128xf32> -> vector<2x128xf32>
    %c0_9 = arith.constant 0 : index
    %c0_10 = arith.constant 0 : index
    %10 = vector.load %arg4[%c0_9, %c0_10] : memref<128x512xf32, #tpu.memory_space<vmem>>, vector<128x512xf32>
    %cst_11 = arith.constant dense<0.000000e+00> : vector<2x512xf32>
    %11 = tpu.matmul %9, %10, %cst_11 {dimension_numbers = #tpu.dot_dimension_numbers<[1], [0], [0], [1], [0, 0, 1, 1], [], []>} : vector<2x128xf32>, vector<128x512xf32>, vector<2x512xf32> -> vector<2x512xf32>
    %c0_12 = arith.constant 0 : index
    %c0_13 = arith.constant 0 : index
    %12 = vector.load %arg5[%c0_12, %c0_13] : memref<1x512xf32, #tpu.memory_space<vmem>>, vector<1x512xf32>
    %13 = vector.broadcast %12 : vector<1x512xf32> to vector<2x512xf32>
    %14 = arith.addf %11, %13 : vector<2x512xf32>
    %15 = arith.mulf %14, %14 : vector<2x512xf32>
    %cst_14 = arith.constant dense<0.000000e+00> : vector<2xf32>
    %16 = vector.multi_reduction <add>, %15, %cst_14 [1] : vector<2x512xf32> to vector<2xf32>
    %17 = vector.shape_cast %16 : vector<2xf32> to vector<2x1xf32>
    %cst_15 = arith.constant 9.99999993E-9 : f32
    %18 = vector.broadcast %cst_15 : f32 to vector<2x1xf32>
    %19 = arith.addf %17, %18 : vector<2x1xf32>
    %20 = math.rsqrt %19 : vector<2x1xf32>
    %21 = vector.broadcast %20 : vector<2x1xf32> to vector<2x512xf32>
    %22 = arith.mulf %14, %21 : vector<2x512xf32>
    %c0_16 = arith.constant 0 : index
    %c0_17 = arith.constant 0 : index
    %23 = vector.load %arg6[%c0_16, %c0_17] : memref<512x128xf32, #tpu.memory_space<vmem>>, vector<512x128xf32>
    %cst_18 = arith.constant dense<0.000000e+00> : vector<2x128xf32>
    %24 = tpu.matmul %22, %23, %cst_18 {dimension_numbers = #tpu.dot_dimension_numbers<[1], [0], [0], [1], [0, 0, 1, 1], [], []>} : vector<2x512xf32>, vector<512x128xf32>, vector<2x128xf32> -> vector<2x128xf32>
    %c0_19 = arith.constant 0 : index
    %c0_20 = arith.constant 0 : index
    %25 = vector.load %arg7[%c0_19, %c0_20] : memref<1x128xf32, #tpu.memory_space<vmem>>, vector<1x128xf32>
    %26 = vector.broadcast %25 : vector<1x128xf32> to vector<2x128xf32>
    %27 = arith.addf %24, %26 : vector<2x128xf32>
    %cst_21 = arith.constant 0.000000e+00 : f32
    %28 = vector.broadcast %cst_21 : f32 to vector<2x128xf32>
    %29 = arith.maximumf %27, %28 : vector<2x128xf32>
    %c0_22 = arith.constant 0 : index
    %c0_23 = arith.constant 0 : index
    %30 = vector.load %arg8[%c0_22, %c0_23] : memref<128x384xf32, #tpu.memory_space<vmem>>, vector<128x384xf32>
    %cst_24 = arith.constant dense<0.000000e+00> : vector<2x384xf32>
    %31 = tpu.matmul %29, %30, %cst_24 {dimension_numbers = #tpu.dot_dimension_numbers<[1], [0], [0], [1], [0, 0, 1, 1], [], []>} : vector<2x128xf32>, vector<128x384xf32>, vector<2x384xf32> -> vector<2x384xf32>
    %c0_25 = arith.constant 0 : index
    %c0_26 = arith.constant 0 : index
    %32 = vector.load %arg9[%c0_25, %c0_26] : memref<1x384xf32, #tpu.memory_space<vmem>>, vector<1x384xf32>
    %33 = vector.broadcast %32 : vector<1x384xf32> to vector<2x384xf32>
    %34 = arith.addf %31, %33 : vector<2x384xf32>
    %c0_27 = arith.constant 0 : index
    %c0_28 = arith.constant 0 : index
    %35 = vector.load %arg10[%c0_27, %c0_28] : memref<2x384xf32, #tpu.memory_space<vmem>>, vector<2x384xf32>
    tpu.vector_store %arg10[%c0_27, %c0_28], %34 {strides = array<i32>} : memref<2x384xf32, #tpu.memory_space<vmem>>, vector<2x384xf32>,
    return
  }
}

</mosaic_0001>

<bundles_post_ra>
// kernel: _lambda_.2
= control target key start
LH: loop header
LB: loop body
LE: loop exit
PB: predicated region body
PF: predicated region fallthrough
CT: control target
= control target key end

     0   :  { %v1499_v1 = vmov 0   ;;  %v106_v43 = vlaneseq  ;;  %v1500_v52 = vmov 1983009808   ;;  %s2080_s1 = inlined_call_operand.vmem [shape: bf16[128,256], index: 1, kind: input, shape index: {}]   ;;  %s2081_s0 = inlined_call_operand.vmem [shape: bf16[512,128], index: 0, kind: input, shape index: {}]   ;;  %s2082_s2 = inlined_call_operand.vmem [shape: f32[1,256], index: 2, kind: input, shape index: {}, may-alias: {2,5}]   ;;  %s2083_s3 = inlined_call_operand.vmem [shape: f32[2,512], index: 3, kind: input, shape index: {}]   ;;  %s2084_s4 = inlined_call_operand.vmem [shape: f32[256,256], index: 4, kind: input, shape index: {}]   ;;  %s2085_s5 = inlined_call_operand.vmem [shape: f32[1,256], index: 5, kind: input, shape index: {}, may-alias: {2,5}]   ;;  %s2086_s6 = inlined_call_operand.vmem [shape: f32[2,256], index: 6, kind: output, shape index: {}]  }
   0x1   :  { %v1442_v0 = vld [vmem:[%s2080_s1 + $0x4] ss:$8 sps:$4 sm:$0xff]   ;;  %420 = vmatprep.mubr.bf16.mxu0 %v1499_v1  ;;  %v1444_v2 = vld [vmem:[%s2080_s1] ss:$8 sps:$4 sm:$0xff]   ;;  %v1445_v3 = vld [vmem:[%s2080_s1 + $0x14] ss:$8 sps:$4 sm:$0xff]   ;;  %v873_v53 = vunpack.c.l.s4 %v1500_v52 }
   0x2   :  { %388 = vmatprep.subr.bf16.mxu0 %v1442_v0  ;;  %v1447_v4 = vld [vmem:[%s2080_s1 + $0x10] ss:$8 sps:$4 sm:$0xff]   ;;  %v1448_v5 = vld [vmem:[%s2080_s1 + $0x24] ss:$8 sps:$4 sm:$0xff]   ;;  %v1450_v6 = vld [vmem:[%s2080_s1 + $0x20] ss:$8 sps:$4 sm:$0xff]  }
   0x3   :  { %389 = vmatpush1.bf16.msra.mxu0 %v1444_v2  ;;  %v1451_v7 = vld [vmem:[%s2080_s1 + $0x34] ss:$8 sps:$4 sm:$0xff]   ;;  %v1453_v8 = vld [vmem:[%s2080_s1 + $0x30] ss:$8 sps:$4 sm:$0xff]   ;;  %v1454_v9 = vld [vmem:[%s2080_s1 + $0x44] ss:$8 sps:$4 sm:$0xff]   ;;  %v874_v59 = vunpack.c.0.s8 %v873_v53 }
   0x4   :  { %390 = vmatprep.subr.bf16.mxu0 %v1445_v3  ;;  %v1456_v10 = vld [vmem:[%s2080_s1 + $0x40] ss:$8 sps:$4 sm:$0xff]   ;;  %v1457_v11 = vld [vmem:[%s2080_s1 + $0x54] ss:$8 sps:$4 sm:$0xff]   ;;  %v1459_v12 = vld [vmem:[%s2080_s1 + $0x50] ss:$8 sps:$4 sm:$0xff]  }
   0x5   :  { %v1460_v13 = vld [vmem:[%s2080_s1 + $0x64] ss:$8 sps:$4 sm:$0xff]   ;;  %v1462_v14 = vld [vmem:[%s2080_s1 + $0x60] ss:$8 sps:$4 sm:$0xff]   ;;  %v1463_v15 = vld [vmem:[%s2080_s1 + $0x74] ss:$8 sps:$4 sm:$0xff]  }
   0x6   :  { %v1465_v16 = vld [vmem:[%s2080_s1 + $0x70] ss:$8 sps:$4 sm:$0xff]   ;;  %v1466_v17 = vld [vmem:[%s2081_s0] sm:$0xff]   ;;  %v1467_v18 = vld [vmem:[%s2081_s0 + $0x8] sm:$0xff]   ;;  %v1688_v44 = vshrl.u32 %v106_v43, 7 }
   0x7   :  { %391 = vmatpush1.bf16.msra.mxu0 %v1447_v4  ;;  %v1468_v19 = vld [vmem:[%s2081_s0 + $0x10] sm:$0xff]   ;;  %v1469_v20 = vld [vmem:[%s2081_s0 + $0x18] sm:$0xff]   ;;  %v1470_v21 = vld [vmem:[%s2081_s0 + $0x20] sm:$0xff]  }
   0x8   :  { %392 = vmatprep.subr.bf16.mxu0 %v1448_v5  ;;  %v1471_v22 = vld [vmem:[%s2081_s0 + $0x28] sm:$0xff]   ;;  %v1472_v23 = vld [vmem:[%s2081_s0 + $0x30] sm:$0xff]   ;;  %v1473_v24 = vld [vmem:[%s2081_s0 + $0x38] sm:$0xff]   ;;  %v108_v46 = vsub.s32 0, %v1688_v44  ;;  %v112_v48 = vsub.s32 1, %v1688_v44  ;;  %v1716_v63 = vsub.s32 %v874_v59, %v1688_v44 }
   0x9   :  { %v1474_v25 = vld [vmem:[%s2081_s0 + $0x40] sm:$0xff]   ;;  %v1475_v26 = vld [vmem:[%s2081_s0 + $0x48] sm:$0xff]   ;;  %v1476_v27 = vld [vmem:[%s2081_s0 + $0x50] sm:$0xff]  }
   0xa   :  { %v1477_v28 = vld [vmem:[%s2081_s0 + $0x58] sm:$0xff]   ;;  %v1478_v29 = vld [vmem:[%s2081_s0 + $0x60] sm:$0xff]   ;;  %v1479_v30 = vld [vmem:[%s2081_s0 + $0x68] sm:$0xff]  }
   0xb   :  { %393 = vmatpush1.bf16.msra.mxu0 %v1450_v6  ;;  %v1480_v31 = vld [vmem:[%s2081_s0 + $0x70] sm:$0xff]   ;;  %v1481_v32 = vld [vmem:[%s2081_s0 + $0x78] sm:$0xff]   ;;  %v1482_v33 = vld [vmem:[%s2081_s0 + $0x80] sm:$0xff]  }
   0xc   :  { %394 = vmatprep.subr.bf16.mxu0 %v1451_v7  ;;  %v1483_v34 = vld [vmem:[%s2081_s0 + $0x88] sm:$0xff]   ;;  %v1484_v35 = vld [vmem:[%s2081_s0 + $0x90] sm:$0xff]   ;;  %v1485_v36 = vld [vmem:[%s2081_s0 + $0x98] sm:$0xff]  }
   0xd   :  { %v1486_v37 = vld [vmem:[%s2081_s0 + $0xa0] sm:$0xff]   ;;  %v1487_v38 = vld [vmem:[%s2081_s0 + $0xa8] sm:$0xff]   ;;  %v1488_v39 = vld [vmem:[%s2081_s0 + $0xb0] sm:$0xff]  }
   0xe   :  { %v1489_v40 = vld [vmem:[%s2081_s0 + $0xb8] sm:$0xff]   ;;  %v1490_v41 = vld [vmem:[%s2081_s0 + $0xc0] sm:$0xff]   ;;  %v1491_v42 = vld [vmem:[%s2081_s0 + $0xc8] sm:$0xff]  }
   0xf   :  { %395 = vmatpush1.bf16.msra.mxu0 %v1453_v8  ;;  %v1492_v45 = vld [vmem:[%s2081_s0 + $0xd0] sm:$0xff]   ;;  %v104_v47 = vld [vmem:[%s2082_s2] sm:$0x3]  ;;  %v1493_v56 = vld [vmem:[%s2081_s0 + $0xd8] sm:$0xff]  }
  0x10   :  { %396 = vmatprep.subr.bf16.mxu0 %v1454_v9  ;;  %v1701_v49 = vrot.slane %v104_v47, %v108_v46  ;;  %v1705_v50 = vrot.slane %v104_v47, %v112_v48  ;;  %v1721_v3 = vld [vmem:[%s2083_s3] sm:$0xff]  ;;  %v1496_v43 = vld [vmem:[%s2081_s0 + $0xf0] sm:$0xff]  }
  0x11   :  { %v1726_v6 = vrot.slane %v1721_v3, %v1716_v63 }
  0x13   :  { %397 = vmatpush1.bf16.msra.mxu0 %v1456_v10  ;;  %v886_v10 = vcombine.high %v1726_v6, %v1726_v6 }
  0x14   :  { %398 = vmatprep.subr.bf16.mxu0 %v1457_v11 }
  0x15   :  { %956 = vmatprep.mubr.f32.mxu1 %v886_v10 }
  0x17   :  { %399 = vmatpush1.bf16.msra.mxu0 %v1459_v12 }
  0x18   :  { %400 = vmatprep.subr.bf16.mxu0 %v1460_v13  ;;  %v1494_v13 = vld [vmem:[%s2081_s0 + $0xe0] sm:$0xff]  }
  0x1b   :  { %401 = vmatpush1.bf16.msra.mxu0 %v1462_v14 }
  0x1c   :  { %402 = vmatprep.subr.bf16.mxu0 %v1463_v15 }
  0x1f   :  { %403 = vmatpush1.bf16.msra.mxu0 %v1465_v16 }
  0x22   :  { %421 = vmatmul.mubr.bf16.vlgmr.msra.gmra.mrb[0].mxu0 %v1466_v17 }
  0x23   :  { %430 = vmatprep.mubr.bf16.mxu0 %v1499_v1 }
  0x2a   :  { %431 = vmatmul.mubr.bf16.gmra.mrb[4].mxu0 %v1467_v18 }
  0x2b   :  { %440 = vmatprep.mubr.bf16.mxu0 %v1499_v1 }
  0x32   :  { %441 = vmatmul.mubr.bf16.gmra.mrb[8].mxu0 %v1468_v19 }
  0x33   :  { %450 = vmatprep.mubr.bf16.mxu0 %v1499_v1 }
  0x3a   :  { %451 = vmatmul.mubr.bf16.gmra.mrb[12].mxu0 %v1469_v20 }
  0x3b   :  { %460 = vmatprep.mubr.bf16.mxu0 %v1499_v1 }
  0x42   :  { %461 = vmatmul.mubr.bf16.gmra.mrb[16].mxu0 %v1470_v21 }
  0x43   :  { %470 = vmatprep.mubr.bf16.mxu0 %v1499_v1 }
  0x4a   :  { %471 = vmatmul.mubr.bf16.gmra.mrb[20].mxu0 %v1471_v22 }
  0x4b   :  { %480 = vmatprep.mubr.bf16.mxu0 %v1499_v1 }
  0x52   :  { %481 = vmatmul.mubr.bf16.gmra.mrb[24].mxu0 %v1472_v23 }
  0x53   :  { %490 = vmatprep.mubr.bf16.mxu0 %v1499_v1 }
  0x5a   :  { %491 = vmatmul.mubr.bf16.gmra.mrb[28].mxu0 %v1473_v24 }
  0x5b   :  { %500 = vmatprep.mubr.bf16.mxu0 %v1499_v1 }
  0x62   :  { %501 = vmatmul.mubr.bf16.gmra.mrb[32].mxu0 %v1474_v25 }
  0x63   :  { %510 = vmatprep.mubr.bf16.mxu0 %v1499_v1 }
  0x6a   :  { %511 = vmatmul.mubr.bf16.gmra.mrb[36].mxu0 %v1475_v26 }
  0x6b   :  { %520 = vmatprep.mubr.bf16.mxu0 %v1499_v1 }
  0x72   :  { %521 = vmatmul.mubr.bf16.gmra.mrb[40].mxu0 %v1476_v27 }
  0x73   :  { %530 = vmatprep.mubr.bf16.mxu0 %v1499_v1 }
  0x7a   :  { %531 = vmatmul.mubr.bf16.gmra.mrb[44].mxu0 %v1477_v28  ;;  %v1495_v28 = vld [vmem:[%s2081_s0 + $0xe8] sm:$0xff]  }
  0x7b   :  { %540 = vmatprep.mubr.bf16.mxu0 %v1499_v1 }
  0x82   :  { %541 = vmatmul.mubr.bf16.gmra.mrb[48].mxu0 %v1478_v29 }
  0x83   :  { %550 = vmatprep.mubr.bf16.mxu0 %v1499_v1 }
  0x8a   :  { %551 = vmatmul.mubr.bf16.gmra.mrb[52].mxu0 %v1479_v30 }
  0x8b   :  { %560 = vmatprep.mubr.bf16.mxu0 %v1499_v1 }
  0x92   :  { %561 = vmatmul.mubr.bf16.gmra.mrb[56].mxu0 %v1480_v31 }
  0x93   :  { %570 = vmatprep.mubr.bf16.mxu0 %v1499_v1 }
  0x9a   :  { %571 = vmatmul.mubr.bf16.gmra.mrb[60].mxu0 %v1481_v32 }
  0x9b   :  { %580 = vmatprep.mubr.bf16.mxu0 %v1499_v1 }
  0xa2   :  { %581 = vmatmul.mubr.bf16.gmra.mrb[64].mxu0 %v1482_v33 }
  0xa3   :  { %590 = vmatprep.mubr.bf16.mxu0 %v1499_v1 }
  0xaa   :  { %591 = vmatmul.mubr.bf16.gmra.mrb[68].mxu0 %v1483_v34 }
  0xab   :  { %600 = vmatprep.mubr.bf16.mxu0 %v1499_v1 }
  0xb2   :  { %601 = vmatmul.mubr.bf16.gmra.mrb[72].mxu0 %v1484_v35 }
  0xb3   :  { %610 = vmatprep.mubr.bf16.mxu0 %v1499_v1 }
  0xba   :  { %611 = vmatmul.mubr.bf16.gmra.mrb[76].mxu0 %v1485_v36 }
  0xbb   :  { %620 = vmatprep.mubr.bf16.mxu0 %v1499_v1 }
  0xc2   :  { %621 = vmatmul.mubr.bf16.gmra.mrb[80].mxu0 %v1486_v37 }
  0xc3   :  { %630 = vmatprep.mubr.bf16.mxu0 %v1499_v1 }
  0xca   :  { %631 = vmatmul.mubr.bf16.gmra.mrb[84].mxu0 %v1487_v38 }
  0xcb   :  { %640 = vmatprep.mubr.bf16.mxu0 %v1499_v1 }
  0xd2   :  { %641 = vmatmul.mubr.bf16.gmra.mrb[88].mxu0 %v1488_v39 }
  0xd3   :  { %650 = vmatprep.mubr.bf16.mxu0 %v1499_v1 }
  0xda   :  { %651 = vmatmul.mubr.bf16.gmra.mrb[92].mxu0 %v1489_v40 }
  0xdb   :  { %660 = vmatprep.mubr.bf16.mxu0 %v1499_v1 }
  0xe2   :  { %661 = vmatmul.mubr.bf16.gmra.mrb[96].mxu0 %v1490_v41 }
  0xe3   :  { %670 = vmatprep.mubr.bf16.mxu0 %v1499_v1 }
  0xea   :  { %671 = vmatmul.mubr.bf16.gmra.mrb[100].mxu0 %v1491_v42 }
  0xeb   :  { %680 = vmatprep.mubr.bf16.mxu0 %v1499_v1 }
  0xf2   :  { %681 = vmatmul.mubr.bf16.gmra.mrb[104].mxu0 %v1492_v45 }
  0xf3   :  { %690 = vmatprep.mubr.bf16.mxu0 %v1499_v1 }
  0xf5   :  { %v422_v51 = vpop.f32.mrb[0].mxu0 }
  0xf6   :  { %v423_v54 = vadd.f32 %v422_v51, %v1701_v49  ;;  %v424_v55 = vpop.f32.mrb[1].mxu0 }
  0xf7   :  { %v425_v57 = vadd.f32 %v424_v55, %v1705_v50  ;;  %v426_v58 = vpop.f32.mrb[2].mxu0 }
  0xf8   :  { %v427_v60 = vadd.f32 %v426_v58, %v1701_v49  ;;  %v428_v61 = vpop.f32.mrb[3].mxu0  ;;  %v741_v0 = vmax.f32 %v423_v54, 0.0 }
  0xf9   :  { %v429_v62 = vadd.f32 %v428_v61, %v1705_v50  ;;  %v742_v4 = vmax.f32 %v425_v57, 0.0 }
  0xfa   :  { %v743_v2 = vmax.f32 %v427_v60, 0.0  ;;  %691 = vmatmul.mubr.bf16.gmra.mrb[108].mxu0 %v1493_v56 }
  0xfb   :  { %v744_v5 = vmax.f32 %v429_v62, 0.0  ;;  %700 = vmatprep.mubr.bf16.mxu0 %v1499_v1 }
  0xfc   :  { %v1248_v7 = vpack.c.bf16 %v743_v2, %v741_v0  ;;  %v1497_v0 = vld [vmem:[%s2081_s0 + $0xf8] sm:$0xff]  }
  0xfd   :  { %v432_v8 = vpop.f32.mrb[4].mxu0  ;;  %v1246_v9 = vpack.c.bf16 %v744_v5, %v742_v4 }
  0xfe   :  { %v433_v11 = vadd.f32 %v432_v8, %v1701_v49  ;;  %v434_v12 = vpop.f32.mrb[5].mxu0 }
  0xff   :  { %v435_v14 = vadd.f32 %v434_v12, %v1705_v50  ;;  %v436_v15 = vpop.f32.mrb[6].mxu0  ;;  %1247 = vmatprep.subr.bf16.mxu1 %v1246_v9 }
 0x100   :  { %v437_v16 = vadd.f32 %v436_v15, %v1701_v49  ;;  %v438_v17 = vpop.f32.mrb[7].mxu0  ;;  %1249 = vmatpush1.bf16.msra.mxu1 %v1248_v7  ;;  %v745_v19 = vmax.f32 %v433_v11, 0.0 }
 0x101   :  { %v439_v18 = vadd.f32 %v438_v17, %v1705_v50  ;;  %v746_v21 = vmax.f32 %v435_v14, 0.0 }
 0x102   :  { %v747_v20 = vmax.f32 %v437_v16, 0.0  ;;  %701 = vmatmul.mubr.bf16.gmra.mrb[112].mxu0 %v1494_v13 }
 0x103   :  { %v748_v22 = vmax.f32 %v439_v18, 0.0  ;;  %710 = vmatprep.mubr.bf16.mxu0 %v1499_v1 }
 0x104   :  { %v1252_v23 = vpack.c.bf16 %v747_v20, %v745_v19 }
 0x105   :  { %v1250_v24 = vpack.c.bf16 %v748_v22, %v746_v21  ;;  %v442_v25 = vpop.f32.mrb[8].mxu0 }
 0x106   :  { %v443_v26 = vadd.f32 %v442_v25, %v1701_v49  ;;  %v444_v27 = vpop.f32.mrb[9].mxu0 }
 0x107   :  { %v445_v29 = vadd.f32 %v444_v27, %v1705_v50  ;;  %v446_v30 = vpop.f32.mrb[10].mxu0  ;;  %1251 = vmatprep.subr.bf16.mxu1 %v1250_v24 }
 0x108   :  { %v447_v31 = vadd.f32 %v446_v30, %v1701_v49  ;;  %v448_v32 = vpop.f32.mrb[11].mxu0  ;;  %1253 = vmatpush1.bf16.msra.mxu1 %v1252_v23  ;;  %v749_v34 = vmax.f32 %v443_v26, 0.0 }
 0x109   :  { %v449_v33 = vadd.f32 %v448_v32, %v1705_v50  ;;  %v750_v36 = vmax.f32 %v445_v29, 0.0 }
 0x10a   :  { %v751_v35 = vmax.f32 %v447_v31, 0.0  ;;  %711 = vmatmul.mubr.bf16.gmra.mrb[116].mxu0 %v1495_v28 }
 0x10b   :  { %v752_v37 = vmax.f32 %v449_v33, 0.0  ;;  %720 = vmatprep.mubr.bf16.mxu0 %v1499_v1 }
 0x10c   :  { %v1256_v38 = vpack.c.bf16 %v751_v35, %v749_v34 }
 0x10d   :  { %v1254_v39 = vpack.c.bf16 %v752_v37, %v750_v36  ;;  %v452_v40 = vpop.f32.mrb[12].mxu0 }
 0x10e   :  { %v453_v41 = vadd.f32 %v452_v40, %v1701_v49  ;;  %v454_v42 = vpop.f32.mrb[13].mxu0 }
 0x10f   :  { %v455_v45 = vadd.f32 %v454_v42, %v1705_v50  ;;  %v456_v47 = vpop.f32.mrb[14].mxu0  ;;  %1255 = vmatprep.subr.bf16.mxu1 %v1254_v39 }
 0x110   :  { %v457_v51 = vadd.f32 %v456_v47, %v1701_v49  ;;  %v458_v52 = vpop.f32.mrb[15].mxu0  ;;  %1257 = vmatpush1.bf16.msra.mxu1 %v1256_v38  ;;  %v753_v54 = vmax.f32 %v453_v41, 0.0 }
 0x111   :  { %v459_v53 = vadd.f32 %v458_v52, %v1705_v50  ;;  %v754_v56 = vmax.f32 %v455_v45, 0.0 }
 0x112   :  { %v755_v55 = vmax.f32 %v457_v51, 0.0  ;;  %721 = vmatmul.mubr.bf16.gmra.mrb[120].mxu0 %v1496_v43 }
 0x113   :  { %v756_v57 = vmax.f32 %v459_v53, 0.0  ;;  %730 = vmatprep.mubr.bf16.mxu0 %v1499_v1 }
 0x114   :  { %v1260_v58 = vpack.c.bf16 %v755_v55, %v753_v54 }
 0x115   :  { %v1258_v59 = vpack.c.bf16 %v756_v57, %v754_v56  ;;  %v462_v60 = vpop.f32.mrb[16].mxu0 }
 0x116   :  { %v463_v61 = vadd.f32 %v462_v60, %v1701_v49  ;;  %v464_v62 = vpop.f32.mrb[17].mxu0 }
 0x117   :  { %v465_v2 = vadd.f32 %v464_v62, %v1705_v50  ;;  %v466_v4 = vpop.f32.mrb[18].mxu0  ;;  %1259 = vmatprep.subr.bf16.mxu1 %v1258_v59 }
 0x118   :  { %v467_v5 = vadd.f32 %v466_v4, %v1701_v49  ;;  %v468_v7 = vpop.f32.mrb[19].mxu0  ;;  %1261 = vmatpush1.bf16.msra.mxu1 %v1260_v58  ;;  %v757_v8 = vmax.f32 %v463_v61, 0.0 }
 0x119   :  { %v469_v1 = vadd.f32 %v468_v7, %v1705_v50  ;;  %v758_v10 = vmax.f32 %v465_v2, 0.0 }
 0x11a   :  { %v759_v9 = vmax.f32 %v467_v5, 0.0  ;;  %731 = vmatmul.mubr.bf16.gmra.mrb[124].mxu0 %v1497_v0 }
 0x11b   :  { %v760_v11 = vmax.f32 %v469_v1, 0.0 }
 0x11c   :  { %v1264_v12 = vpack.c.bf16 %v759_v9, %v757_v8 }
 0x11d   :  { %v1262_v13 = vpack.c.bf16 %v760_v11, %v758_v10  ;;  %v472_v14 = vpop.f32.mrb[20].mxu0 }
 0x11e   :  { %v473_v15 = vadd.f32 %v472_v14, %v1701_v49  ;;  %v474_v16 = vpop.f32.mrb[21].mxu0 }
 0x11f   :  { %v475_v17 = vadd.f32 %v474_v16, %v1705_v50  ;;  %v476_v18 = vpop.f32.mrb[22].mxu0  ;;  %1263 = vmatprep.subr.bf16.mxu1 %v1262_v13 }
 0x120   :  { %v477_v19 = vadd.f32 %v476_v18, %v1701_v49  ;;  %v478_v20 = vpop.f32.mrb[23].mxu0  ;;  %1265 = vmatpush1.bf16.msra.mxu1 %v1264_v12  ;;  %v761_v22 = vmax.f32 %v473_v15, 0.0 }
 0x121   :  { %v479_v21 = vadd.f32 %v478_v20, %v1705_v50  ;;  %v762_v24 = vmax.f32 %v475_v17, 0.0 }
 0x122   :  { %v763_v23 = vmax.f32 %v477_v19, 0.0 }
 0x123   :  { %v764_v25 = vmax.f32 %v479_v21, 0.0 }
 0x124   :  { %v1268_v26 = vpack.c.bf16 %v763_v23, %v761_v22 }
 0x125   :  { %v1266_v27 = vpack.c.bf16 %v764_v25, %v762_v24  ;;  %v482_v28 = vpop.f32.mrb[24].mxu0 }
 0x126   :  { %v483_v29 = vadd.f32 %v482_v28, %v1701_v49  ;;  %v484_v30 = vpop.f32.mrb[25].mxu0 }
 0x127   :  { %v485_v31 = vadd.f32 %v484_v30, %v1705_v50  ;;  %v486_v32 = vpop.f32.mrb[26].mxu0  ;;  %1267 = vmatprep.subr.bf16.mxu1 %v1266_v27 }
 0x128   :  { %v487_v33 = vadd.f32 %v486_v32, %v1701_v49  ;;  %v488_v34 = vpop.f32.mrb[27].mxu0  ;;  %1269 = vmatpush1.bf16.msra.mxu1 %v1268_v26  ;;  %v765_v36 = vmax.f32 %v483_v29, 0.0 }
 0x129   :  { %v489_v35 = vadd.f32 %v488_v34, %v1705_v50  ;;  %v766_v38 = vmax.f32 %v485_v31, 0.0 }
 0x12a   :  { %v767_v37 = vmax.f32 %v487_v33, 0.0 }
 0x12b   :  { %v768_v39 = vmax.f32 %v489_v35, 0.0 }
 0x12c   :  { %v1272_v40 = vpack.c.bf16 %v767_v37, %v765_v36 }
 0x12d   :  { %v1270_v41 = vpack.c.bf16 %v768_v39, %v766_v38  ;;  %v492_v42 = vpop.f32.mrb[28].mxu0 }
 0x12e   :  { %v493_v43 = vadd.f32 %v492_v42, %v1701_v49  ;;  %v494_v45 = vpop.f32.mrb[29].mxu0 }
 0x12f   :  { %v495_v47 = vadd.f32 %v494_v45, %v1705_v50  ;;  %v496_v51 = vpop.f32.mrb[30].mxu0  ;;  %1271 = vmatprep.subr.bf16.mxu1 %v1270_v41 }
 0x130   :  { %v497_v52 = vadd.f32 %v496_v51, %v1701_v49  ;;  %v498_v53 = vpop.f32.mrb[31].mxu0  ;;  %1273 = vmatpush1.bf16.msra.mxu1 %v1272_v40  ;;  %v769_v55 = vmax.f32 %v493_v43, 0.0 }
 0x131   :  { %v499_v54 = vadd.f32 %v498_v53, %v1705_v50  ;;  %v770_v57 = vmax.f32 %v495_v47, 0.0 }
 0x132   :  { %v771_v56 = vmax.f32 %v497_v52, 0.0 }
 0x133   :  { %v772_v58 = vmax.f32 %v499_v54, 0.0 }
 0x134   :  { %v1276_v59 = vpack.c.bf16 %v771_v56, %v769_v55 }
 0x135   :  { %v1274_v60 = vpack.c.bf16 %v772_v58, %v770_v57  ;;  %v502_v61 = vpop.f32.mrb[32].mxu0 }
 0x136   :  { %v503_v62 = vadd.f32 %v502_v61, %v1701_v49  ;;  %v504_v0 = vpop.f32.mrb[33].mxu0 }
 0x137   :  { %v505_v2 = vadd.f32 %v504_v0, %v1705_v50  ;;  %v506_v4 = vpop.f32.mrb[34].mxu0  ;;  %1275 = vmatprep.subr.bf16.mxu1 %v1274_v60 }
 0x138   :  { %v507_v5 = vadd.f32 %v506_v4, %v1701_v49  ;;  %v508_v7 = vpop.f32.mrb[35].mxu0  ;;  %1277 = vmatpush1.bf16.msra.mxu1 %v1276_v59  ;;  %v773_v8 = vmax.f32 %v503_v62, 0.0 }
 0x139   :  { %v509_v1 = vadd.f32 %v508_v7, %v1705_v50  ;;  %v774_v10 = vmax.f32 %v505_v2, 0.0 }
 0x13a   :  { %v775_v9 = vmax.f32 %v507_v5, 0.0 }
 0x13b   :  { %v776_v11 = vmax.f32 %v509_v1, 0.0 }
 0x13c   :  { %v1280_v12 = vpack.c.bf16 %v775_v9, %v773_v8 }
 0x13d   :  { %v1278_v13 = vpack.c.bf16 %v776_v11, %v774_v10  ;;  %v512_v14 = vpop.f32.mrb[36].mxu0 }
 0x13e   :  { %v513_v15 = vadd.f32 %v512_v14, %v1701_v49  ;;  %v514_v16 = vpop.f32.mrb[37].mxu0 }
 0x13f   :  { %v515_v17 = vadd.f32 %v514_v16, %v1705_v50  ;;  %v516_v18 = vpop.f32.mrb[38].mxu0  ;;  %1279 = vmatprep.subr.bf16.mxu1 %v1278_v13 }
 0x140   :  { %v517_v19 = vadd.f32 %v516_v18, %v1701_v49  ;;  %v518_v20 = vpop.f32.mrb[39].mxu0  ;;  %1281 = vmatpush1.bf16.msra.mxu1 %v1280_v12  ;;  %v777_v22 = vmax.f32 %v513_v15, 0.0 }
 0x141   :  { %v519_v21 = vadd.f32 %v518_v20, %v1705_v50  ;;  %v778_v24 = vmax.f32 %v515_v17, 0.0 }
 0x142   :  { %v779_v23 = vmax.f32 %v517_v19, 0.0 }
 0x143   :  { %v780_v25 = vmax.f32 %v519_v21, 0.0 }
 0x144   :  { %v1284_v26 = vpack.c.bf16 %v779_v23, %v777_v22 }
 0x145   :  { %v1282_v27 = vpack.c.bf16 %v780_v25, %v778_v24  ;;  %v522_v28 = vpop.f32.mrb[40].mxu0 }
 0x146   :  { %v523_v29 = vadd.f32 %v522_v28, %v1701_v49  ;;  %v524_v30 = vpop.f32.mrb[41].mxu0 }
 0x147   :  { %v525_v31 = vadd.f32 %v524_v30, %v1705_v50  ;;  %v526_v32 = vpop.f32.mrb[42].mxu0  ;;  %1283 = vmatprep.subr.bf16.mxu1 %v1282_v27 }
 0x148   :  { %v527_v33 = vadd.f32 %v526_v32, %v1701_v49  ;;  %v528_v34 = vpop.f32.mrb[43].mxu0  ;;  %1285 = vmatpush1.bf16.msra.mxu1 %v1284_v26  ;;  %v781_v36 = vmax.f32 %v523_v29, 0.0 }
 0x149   :  { %v529_v35 = vadd.f32 %v528_v34, %v1705_v50  ;;  %v782_v38 = vmax.f32 %v525_v31, 0.0 }
 0x14a   :  { %v783_v37 = vmax.f32 %v527_v33, 0.0 }
 0x14b   :  { %v784_v39 = vmax.f32 %v529_v35, 0.0 }
 0x14c   :  { %v1288_v40 = vpack.c.bf16 %v783_v37, %v781_v36 }
 0x14d   :  { %v1286_v41 = vpack.c.bf16 %v784_v39, %v782_v38  ;;  %v532_v42 = vpop.f32.mrb[44].mxu0 }
 0x14e   :  { %v533_v43 = vadd.f32 %v532_v42, %v1701_v49  ;;  %v534_v45 = vpop.f32.mrb[45].mxu0 }
 0x14f   :  { %v535_v47 = vadd.f32 %v534_v45, %v1705_v50  ;;  %v536_v51 = vpop.f32.mrb[46].mxu0  ;;  %1287 = vmatprep.subr.bf16.mxu1 %v1286_v41 }
 0x150   :  { %v537_v52 = vadd.f32 %v536_v51, %v1701_v49  ;;  %v538_v53 = vpop.f32.mrb[47].mxu0  ;;  %1289 = vmatpush1.bf16.msra.mxu1 %v1288_v40  ;;  %v785_v55 = vmax.f32 %v533_v43, 0.0 }
 0x151   :  { %v539_v54 = vadd.f32 %v538_v53, %v1705_v50  ;;  %v786_v57 = vmax.f32 %v535_v47, 0.0 }
 0x152   :  { %v787_v56 = vmax.f32 %v537_v52, 0.0 }
 0x153   :  { %v788_v58 = vmax.f32 %v539_v54, 0.0 }
 0x154   :  { %v1292_v59 = vpack.c.bf16 %v787_v56, %v785_v55 }
 0x155   :  { %v1290_v60 = vpack.c.bf16 %v788_v58, %v786_v57  ;;  %v542_v61 = vpop.f32.mrb[48].mxu0  ;;  %v871_v57 = vcombine.high %v1721_v3, %v1721_v3 }
 0x156   :  { %v543_v62 = vadd.f32 %v542_v61, %v1701_v49  ;;  %v544_v0 = vpop.f32.mrb[49].mxu0 }
 0x157   :  { %v545_v2 = vadd.f32 %v544_v0, %v1705_v50  ;;  %v546_v4 = vpop.f32.mrb[50].mxu0  ;;  %1291 = vmatprep.subr.bf16.mxu1 %v1290_v60 }
 0x158   :  { %v547_v5 = vadd.f32 %v546_v4, %v1701_v49  ;;  %v548_v7 = vpop.f32.mrb[51].mxu0  ;;  %1293 = vmatpush1.bf16.msra.mxu1 %v1292_v59  ;;  %v789_v8 = vmax.f32 %v543_v62, 0.0  ;;  %v1809_v4 = vrot.slane %v871_v57, %v1716_v63 }
 0x159   :  { %v549_v1 = vadd.f32 %v548_v7, %v1705_v50  ;;  %v790_v10 = vmax.f32 %v545_v2, 0.0 }
 0x15a   :  { %v791_v9 = vmax.f32 %v547_v5, 0.0  ;;  %v887_v3 = vcombine.high %v1809_v4, %v1809_v4 }
 0x15b   :  { %v792_v11 = vmax.f32 %v549_v1, 0.0 }
 0x15c   :  { %v1296_v12 = vpack.c.bf16 %v791_v9, %v789_v8 }
 0x15d   :  { %v1294_v13 = vpack.c.bf16 %v792_v11, %v790_v10  ;;  %v552_v14 = vpop.f32.mrb[52].mxu0 }
 0x15e   :  { %v553_v15 = vadd.f32 %v552_v14, %v1701_v49  ;;  %v554_v16 = vpop.f32.mrb[53].mxu0 }
 0x15f   :  { %v555_v17 = vadd.f32 %v554_v16, %v1705_v50  ;;  %v556_v18 = vpop.f32.mrb[54].mxu0  ;;  %1295 = vmatprep.subr.bf16.mxu1 %v1294_v13 }
 0x160   :  { %v557_v19 = vadd.f32 %v556_v18, %v1701_v49  ;;  %v558_v20 = vpop.f32.mrb[55].mxu0  ;;  %1297 = vmatpush1.bf16.msra.mxu1 %v1296_v12  ;;  %v793_v22 = vmax.f32 %v553_v15, 0.0 }
 0x161   :  { %v559_v21 = vadd.f32 %v558_v20, %v1705_v50  ;;  %v794_v24 = vmax.f32 %v555_v17, 0.0 }
 0x162   :  { %v795_v23 = vmax.f32 %v557_v19, 0.0 }
 0x163   :  { %v796_v25 = vmax.f32 %v559_v21, 0.0 }
 0x164   :  { %v1300_v26 = vpack.c.bf16 %v795_v23, %v793_v22 }
 0x165   :  { %v1298_v27 = vpack.c.bf16 %v796_v25, %v794_v24  ;;  %v562_v28 = vpop.f32.mrb[56].mxu0 }
 0x166   :  { %v563_v29 = vadd.f32 %v562_v28, %v1701_v49  ;;  %v564_v30 = vpop.f32.mrb[57].mxu0 }
 0x167   :  { %v565_v31 = vadd.f32 %v564_v30, %v1705_v50  ;;  %v566_v32 = vpop.f32.mrb[58].mxu0  ;;  %1299 = vmatprep.subr.bf16.mxu1 %v1298_v27 }
 0x168   :  { %v567_v33 = vadd.f32 %v566_v32, %v1701_v49  ;;  %v568_v34 = vpop.f32.mrb[59].mxu0  ;;  %1301 = vmatpush1.bf16.msra.mxu1 %v1300_v26  ;;  %v797_v36 = vmax.f32 %v563_v29, 0.0 }
 0x169   :  { %v569_v35 = vadd.f32 %v568_v34, %v1705_v50  ;;  %v798_v38 = vmax.f32 %v565_v31, 0.0 }
 0x16a   :  { %v799_v37 = vmax.f32 %v567_v33, 0.0 }
 0x16b   :  { %v800_v39 = vmax.f32 %v569_v35, 0.0 }
 0x16c   :  { %v1304_v40 = vpack.c.bf16 %v799_v37, %v797_v36 }
 0x16d   :  { %v1302_v41 = vpack.c.bf16 %v800_v39, %v798_v38  ;;  %v572_v42 = vpop.f32.mrb[60].mxu0 }
 0x16e   :  { %v573_v43 = vadd.f32 %v572_v42, %v1701_v49  ;;  %v574_v45 = vpop.f32.mrb[61].mxu0 }
 0x16f   :  { %v575_v47 = vadd.f32 %v574_v45, %v1705_v50  ;;  %v576_v51 = vpop.f32.mrb[62].mxu0  ;;  %1303 = vmatprep.subr.bf16.mxu1 %v1302_v41 }
 0x170   :  { %v577_v52 = vadd.f32 %v576_v51, %v1701_v49  ;;  %v578_v53 = vpop.f32.mrb[63].mxu0  ;;  %1305 = vmatpush1.bf16.msra.mxu1 %v1304_v40  ;;  %v801_v55 = vmax.f32 %v573_v43, 0.0 }
 0x171   :  { %v579_v54 = vadd.f32 %v578_v53, %v1705_v50  ;;  %v802_v58 = vmax.f32 %v575_v47, 0.0 }
 0x172   :  { %v803_v56 = vmax.f32 %v577_v52, 0.0 }
 0x173   :  { %v804_v59 = vmax.f32 %v579_v54, 0.0 }
 0x174   :  { %v1308_v60 = vpack.c.bf16 %v803_v56, %v801_v55 }
 0x175   :  { %v1306_v61 = vpack.c.bf16 %v804_v59, %v802_v58  ;;  %v582_v62 = vpop.f32.mrb[64].mxu0 }
 0x176   :  { %v583_v0 = vadd.f32 %v582_v62, %v1701_v49  ;;  %v584_v2 = vpop.f32.mrb[65].mxu0 }
 0x177   :  { %v585_v5 = vadd.f32 %v584_v2, %v1705_v50  ;;  %v586_v7 = vpop.f32.mrb[66].mxu0  ;;  %1307 = vmatprep.subr.bf16.mxu1 %v1306_v61 }
 0x178   :  { %v587_v1 = vadd.f32 %v586_v7, %v1701_v49  ;;  %v588_v8 = vpop.f32.mrb[67].mxu0  ;;  %1309 = vmatpush1.bf16.msra.mxu1 %v1308_v60  ;;  %v805_v10 = vmax.f32 %v583_v0, 0.0 }
 0x179   :  { %v589_v9 = vadd.f32 %v588_v8, %v1705_v50  ;;  %v806_v12 = vmax.f32 %v585_v5, 0.0 }
 0x17a   :  { %v807_v11 = vmax.f32 %v587_v1, 0.0 }
 0x17b   :  { %v808_v13 = vmax.f32 %v589_v9, 0.0  ;;  %957 = vmatmul.mubr.f32.vlgmr.msra.gmra.mrb[0].mxu1 %v1726_v6 }
 0x17c   :  { %v1312_v63 = vpack.c.bf16 %v807_v11, %v805_v10  ;;  %1027 = vmatprep.mubr.f32.mxu1 %v887_v3 }
 0x17d   :  { %v1310_v14 = vpack.c.bf16 %v808_v13, %v806_v12  ;;  %v592_v15 = vpop.f32.mrb[68].mxu0 }
 0x17e   :  { %v593_v16 = vadd.f32 %v592_v15, %v1701_v49  ;;  %v594_v17 = vpop.f32.mrb[69].mxu0 }
 0x17f   :  { %v595_v18 = vadd.f32 %v594_v17, %v1705_v50  ;;  %v596_v19 = vpop.f32.mrb[70].mxu0  ;;  %1311 = vmatprep.subr.bf16.mxu1 %v1310_v14 }
 0x180   :  { %v597_v20 = vadd.f32 %v596_v19, %v1701_v49  ;;  %v598_v21 = vpop.f32.mrb[71].mxu0  ;;  %1313 = vmatpush1.bf16.msra.mxu1 %v1312_v63  ;;  %v809_v23 = vmax.f32 %v593_v16, 0.0 }
 0x181   :  { %v599_v22 = vadd.f32 %v598_v21, %v1705_v50  ;;  %v810_v6 = vmax.f32 %v595_v18, 0.0 }
 0x182   :  { %v811_v24 = vmax.f32 %v597_v20, 0.0 }
 0x183   :  { %v812_v25 = vmax.f32 %v599_v22, 0.0 }
 0x184   :  { %v1316_v26 = vpack.c.bf16 %v811_v24, %v809_v23 }
 0x185   :  { %v1314_v27 = vpack.c.bf16 %v812_v25, %v810_v6  ;;  %v602_v28 = vpop.f32.mrb[72].mxu0 }
 0x186   :  { %v603_v29 = vadd.f32 %v602_v28, %v1701_v49  ;;  %v604_v30 = vpop.f32.mrb[73].mxu0 }
 0x187   :  { %v605_v31 = vadd.f32 %v604_v30, %v1705_v50  ;;  %v606_v32 = vpop.f32.mrb[74].mxu0  ;;  %1315 = vmatprep.subr.bf16.mxu1 %v1314_v27 }
 0x188   :  { %v607_v33 = vadd.f32 %v606_v32, %v1701_v49  ;;  %v608_v34 = vpop.f32.mrb[75].mxu0  ;;  %1317 = vmatpush1.bf16.msra.mxu1 %v1316_v26  ;;  %v813_v36 = vmax.f32 %v603_v29, 0.0 }
 0x189   :  { %v609_v35 = vadd.f32 %v608_v34, %v1705_v50  ;;  %v814_v38 = vmax.f32 %v605_v31, 0.0 }
 0x18a   :  { %v815_v37 = vmax.f32 %v607_v33, 0.0 }
 0x18b   :  { %v816_v39 = vmax.f32 %v609_v35, 0.0 }
 0x18c   :  { %v1320_v40 = vpack.c.bf16 %v815_v37, %v813_v36 }
 0x18d   :  { %v1318_v41 = vpack.c.bf16 %v816_v39, %v814_v38  ;;  %v612_v42 = vpop.f32.mrb[76].mxu0 }
 0x18e   :  { %v613_v43 = vadd.f32 %v612_v42, %v1701_v49  ;;  %v614_v45 = vpop.f32.mrb[77].mxu0 }
 0x18f   :  { %v615_v47 = vadd.f32 %v614_v45, %v1705_v50  ;;  %v616_v51 = vpop.f32.mrb[78].mxu0  ;;  %1319 = vmatprep.subr.bf16.mxu1 %v1318_v41 }
 0x190   :  { %v617_v52 = vadd.f32 %v616_v51, %v1701_v49  ;;  %v618_v53 = vpop.f32.mrb[79].mxu0  ;;  %1321 = vmatpush1.bf16.msra.mxu1 %v1320_v40  ;;  %v817_v55 = vmax.f32 %v613_v43, 0.0 }
 0x191   :  { %v619_v54 = vadd.f32 %v618_v53, %v1705_v50  ;;  %v818_v57 = vmax.f32 %v615_v47, 0.0 }
 0x192   :  { %v819_v56 = vmax.f32 %v617_v52, 0.0 }
 0x193   :  { %v820_v58 = vmax.f32 %v619_v54, 0.0 }
 0x194   :  { %v1324_v59 = vpack.c.bf16 %v819_v56, %v817_v55 }
 0x195   :  { %v1322_v60 = vpack.c.bf16 %v820_v58, %v818_v57  ;;  %v622_v61 = vpop.f32.mrb[80].mxu0 }
 0x196   :  { %v623_v62 = vadd.f32 %v622_v61, %v1701_v49  ;;  %v624_v0 = vpop.f32.mrb[81].mxu0 }
 0x197   :  { %v625_v2 = vadd.f32 %v624_v0, %v1705_v50  ;;  %v626_v5 = vpop.f32.mrb[82].mxu0  ;;  %1323 = vmatprep.subr.bf16.mxu1 %v1322_v60 }
 0x198   :  { %v627_v7 = vadd.f32 %v626_v5, %v1701_v49  ;;  %v628_v1 = vpop.f32.mrb[83].mxu0  ;;  %1325 = vmatpush1.bf16.msra.mxu1 %v1324_v59  ;;  %v821_v3 = vmax.f32 %v623_v62, 0.0 }
 0x199   :  { %v629_v8 = vadd.f32 %v628_v1, %v1705_v50  ;;  %v822_v10 = vmax.f32 %v625_v2, 0.0 }
 0x19a   :  { %v823_v9 = vmax.f32 %v627_v7, 0.0 }
 0x19b   :  { %v824_v11 = vmax.f32 %v629_v8, 0.0 }
 0x19c   :  { %v1328_v12 = vpack.c.bf16 %v823_v9, %v821_v3 }
 0x19d   :  { %v1326_v13 = vpack.c.bf16 %v824_v11, %v822_v10  ;;  %v632_v63 = vpop.f32.mrb[84].mxu0 }
 0x19e   :  { %v633_v14 = vadd.f32 %v632_v63, %v1701_v49  ;;  %v634_v15 = vpop.f32.mrb[85].mxu0 }
 0x19f   :  { %v635_v16 = vadd.f32 %v634_v15, %v1705_v50  ;;  %v636_v17 = vpop.f32.mrb[86].mxu0  ;;  %1327 = vmatprep.subr.bf16.mxu1 %v1326_v13 }
 0x1a0   :  { %v637_v18 = vadd.f32 %v636_v17, %v1701_v49  ;;  %v638_v19 = vpop.f32.mrb[87].mxu0  ;;  %1329 = vmatpush1.bf16.msra.mxu1 %v1328_v12  ;;  %v825_v21 = vmax.f32 %v633_v14, 0.0 }
 0x1a1   :  { %v639_v20 = vadd.f32 %v638_v19, %v1705_v50  ;;  %v826_v23 = vmax.f32 %v635_v16, 0.0 }
 0x1a2   :  { %v827_v22 = vmax.f32 %v637_v18, 0.0 }
 0x1a3   :  { %v828_v24 = vmax.f32 %v639_v20, 0.0 }
 0x1a4   :  { %v1332_v6 = vpack.c.bf16 %v827_v22, %v825_v21 }
 0x1a5   :  { %v1330_v25 = vpack.c.bf16 %v828_v24, %v826_v23  ;;  %v642_v26 = vpop.f32.mrb[88].mxu0 }
 0x1a6   :  { %v643_v27 = vadd.f32 %v642_v26, %v1701_v49  ;;  %v644_v28 = vpop.f32.mrb[89].mxu0 }
 0x1a7   :  { %v645_v29 = vadd.f32 %v644_v28, %v1705_v50  ;;  %v646_v30 = vpop.f32.mrb[90].mxu0  ;;  %1331 = vmatprep.subr.bf16.mxu1 %v1330_v25 }
 0x1a8   :  { %v647_v31 = vadd.f32 %v646_v30, %v1701_v49  ;;  %v648_v32 = vpop.f32.mrb[91].mxu0  ;;  %1333 = vmatpush1.bf16.msra.mxu1 %v1332_v6  ;;  %v829_v34 = vmax.f32 %v643_v27, 0.0 }
 0x1a9   :  { %v649_v33 = vadd.f32 %v648_v32, %v1705_v50  ;;  %v830_v36 = vmax.f32 %v645_v29, 0.0 }
 0x1aa   :  { %v831_v35 = vmax.f32 %v647_v31, 0.0 }
 0x1ab   :  { %v832_v37 = vmax.f32 %v649_v33, 0.0 }
 0x1ac   :  { %v1336_v38 = vpack.c.bf16 %v831_v35, %v829_v34 }
 0x1ad   :  { %v1334_v39 = vpack.c.bf16 %v832_v37, %v830_v36  ;;  %v652_v40 = vpop.f32.mrb[92].mxu0 }
 0x1ae   :  { %v653_v41 = vadd.f32 %v652_v40, %v1701_v49  ;;  %v654_v42 = vpop.f32.mrb[93].mxu0 }
 0x1af   :  { %v655_v43 = vadd.f32 %v654_v42, %v1705_v50  ;;  %v656_v45 = vpop.f32.mrb[94].mxu0  ;;  %1335 = vmatprep.subr.bf16.mxu1 %v1334_v39 }
 0x1b0   :  { %v657_v47 = vadd.f32 %v656_v45, %v1701_v49  ;;  %v658_v51 = vpop.f32.mrb[95].mxu0  ;;  %1337 = vmatpush1.bf16.msra.mxu1 %v1336_v38  ;;  %v833_v53 = vmax.f32 %v653_v41, 0.0 }
 0x1b1   :  { %v659_v52 = vadd.f32 %v658_v51, %v1705_v50  ;;  %v834_v55 = vmax.f32 %v655_v43, 0.0 }
 0x1b2   :  { %v835_v54 = vmax.f32 %v657_v47, 0.0 }
 0x1b3   :  { %v836_v56 = vmax.f32 %v659_v52, 0.0 }
 0x1b4   :  { %v1340_v57 = vpack.c.bf16 %v835_v54, %v833_v53 }
 0x1b5   :  { %v1338_v58 = vpack.c.bf16 %v836_v56, %v834_v55  ;;  %v662_v59 = vpop.f32.mrb[96].mxu0 }
 0x1b6   :  { %v663_v60 = vadd.f32 %v662_v59, %v1701_v49  ;;  %v664_v61 = vpop.f32.mrb[97].mxu0 }
 0x1b7   :  { %v665_v62 = vadd.f32 %v664_v61, %v1705_v50  ;;  %v666_v0 = vpop.f32.mrb[98].mxu0  ;;  %1339 = vmatprep.subr.bf16.mxu1 %v1338_v58 }
 0x1b8   :  { %v667_v2 = vadd.f32 %v666_v0, %v1701_v49  ;;  %v668_v5 = vpop.f32.mrb[99].mxu0  ;;  %1341 = vmatpush1.bf16.msra.mxu1 %v1340_v57  ;;  %v837_v1 = vmax.f32 %v663_v60, 0.0 }
 0x1b9   :  { %v669_v7 = vadd.f32 %v668_v5, %v1705_v50  ;;  %v838_v3 = vmax.f32 %v665_v62, 0.0 }
 0x1ba   :  { %v839_v8 = vmax.f32 %v667_v2, 0.0 }
 0x1bb   :  { %v840_v9 = vmax.f32 %v669_v7, 0.0 }
 0x1bc   :  { %v1344_v10 = vpack.c.bf16 %v839_v8, %v837_v1 }
 0x1bd   :  { %v1342_v11 = vpack.c.bf16 %v840_v9, %v838_v3  ;;  %v672_v12 = vpop.f32.mrb[100].mxu0 }
 0x1be   :  { %v673_v13 = vadd.f32 %v672_v12, %v1701_v49  ;;  %v674_v63 = vpop.f32.mrb[101].mxu0 }
 0x1bf   :  { %v675_v14 = vadd.f32 %v674_v63, %v1705_v50  ;;  %v676_v15 = vpop.f32.mrb[102].mxu0  ;;  %1343 = vmatprep.subr.bf16.mxu1 %v1342_v11 }
 0x1c0   :  { %v677_v16 = vadd.f32 %v676_v15, %v1701_v49  ;;  %v678_v17 = vpop.f32.mrb[103].mxu0  ;;  %1345 = vmatpush1.bf16.msra.mxu1 %v1344_v10  ;;  %v841_v19 = vmax.f32 %v673_v13, 0.0 }
 0x1c1   :  { %v679_v18 = vadd.f32 %v678_v17, %v1705_v50  ;;  %v842_v21 = vmax.f32 %v675_v14, 0.0 }
 0x1c2   :  { %v843_v20 = vmax.f32 %v677_v16, 0.0 }
 0x1c3   :  { %v844_v22 = vmax.f32 %v679_v18, 0.0 }
 0x1c4   :  { %v1348_v23 = vpack.c.bf16 %v843_v20, %v841_v19 }
 0x1c5   :  { %v1346_v24 = vpack.c.bf16 %v844_v22, %v842_v21  ;;  %v682_v6 = vpop.f32.mrb[104].mxu0 }
 0x1c6   :  { %v683_v25 = vadd.f32 %v682_v6, %v1701_v49  ;;  %v684_v26 = vpop.f32.mrb[105].mxu0 }
 0x1c7   :  { %v685_v27 = vadd.f32 %v684_v26, %v1705_v50  ;;  %v686_v28 = vpop.f32.mrb[106].mxu0  ;;  %1347 = vmatprep.subr.bf16.mxu1 %v1346_v24 }
 0x1c8   :  { %v687_v29 = vadd.f32 %v686_v28, %v1701_v49  ;;  %v688_v30 = vpop.f32.mrb[107].mxu0  ;;  %1349 = vmatpush1.bf16.msra.mxu1 %v1348_v23  ;;  %v845_v32 = vmax.f32 %v683_v25, 0.0 }
 0x1c9   :  { %v689_v31 = vadd.f32 %v688_v30, %v1705_v50  ;;  %v846_v34 = vmax.f32 %v685_v27, 0.0 }
 0x1ca   :  { %v847_v33 = vmax.f32 %v687_v29, 0.0 }
 0x1cb   :  { %v848_v35 = vmax.f32 %v689_v31, 0.0 }
 0x1cc   :  { %v1352_v36 = vpack.c.bf16 %v847_v33, %v845_v32 }
 0x1cd   :  { %v1350_v37 = vpack.c.bf16 %v848_v35, %v846_v34  ;;  %v692_v38 = vpop.f32.mrb[108].mxu0 }
 0x1ce   :  { %v693_v39 = vadd.f32 %v692_v38, %v1701_v49  ;;  %v694_v40 = vpop.f32.mrb[109].mxu0 }
 0x1cf   :  { %v695_v41 = vadd.f32 %v694_v40, %v1705_v50  ;;  %v696_v42 = vpop.f32.mrb[110].mxu0  ;;  %1351 = vmatprep.subr.bf16.mxu1 %v1350_v37 }
 0x1d0   :  { %v697_v43 = vadd.f32 %v696_v42, %v1701_v49  ;;  %v698_v45 = vpop.f32.mrb[111].mxu0  ;;  %1353 = vmatpush1.bf16.msra.mxu1 %v1352_v36  ;;  %v849_v51 = vmax.f32 %v693_v39, 0.0 }
 0x1d1   :  { %v699_v47 = vadd.f32 %v698_v45, %v1705_v50  ;;  %v850_v53 = vmax.f32 %v695_v41, 0.0 }
 0x1d2   :  { %v851_v52 = vmax.f32 %v697_v43, 0.0 }
 0x1d3   :  { %v852_v54 = vmax.f32 %v699_v47, 0.0 }
 0x1d4   :  { %v1356_v55 = vpack.c.bf16 %v851_v52, %v849_v51  ;;  %v1035_v51 = vld [vmem:[%s2084_s4 + $0x8] sm:$0xff]  ;;  %v1037_v52 = vld [vmem:[%s2084_s4 + $0x18] sm:$0xff] }
 0x1d5   :  { %v1354_v56 = vpack.c.bf16 %v852_v54, %v850_v53  ;;  %v702_v57 = vpop.f32.mrb[112].mxu0 }
 0x1d6   :  { %v703_v58 = vadd.f32 %v702_v57, %v1701_v49  ;;  %v704_v59 = vpop.f32.mrb[113].mxu0  ;;  %v1374_v57 = vpack.c.bf16 %v1037_v52, %v1035_v51  ;;  %v1070_v51 = vld [vmem:[%s2084_s4 + $0x120] sm:$0xff]  ;;  %v1072_v52 = vld [vmem:[%s2084_s4 + $0x130] sm:$0xff] }
 0x1d7   :  { %v705_v60 = vadd.f32 %v704_v59, %v1705_v50  ;;  %v706_v61 = vpop.f32.mrb[114].mxu0  ;;  %1355 = vmatprep.subr.bf16.mxu1 %v1354_v56  ;;  %v1041_v59 = vld [vmem:[%s2084_s4 + $0x38] sm:$0xff] }
 0x1d8   :  { %v707_v62 = vadd.f32 %v706_v61, %v1701_v49  ;;  %v708_v0 = vpop.f32.mrb[115].mxu0  ;;  %1357 = vmatpush1.bf16.msra.mxu1 %v1356_v55  ;;  %v853_v5 = vmax.f32 %v703_v58, 0.0  ;;  %v1039_v58 = vld [vmem:[%s2084_s4 + $0x28] sm:$0xff] }
 0x1d9   :  { %v709_v2 = vadd.f32 %v708_v0, %v1705_v50  ;;  %v854_v1 = vmax.f32 %v705_v60, 0.0  ;;  %v1378_v61 = vpack.c.bf16 %v1041_v59, %v1039_v58  ;;  %v1040_v0 = vld [vmem:[%s2084_s4 + $0x30] sm:$0xff]  ;;  %v1081_v58 = vld [vmem:[%s2084_s4 + $0x178] sm:$0xff] }
 0x1da   :  { %v855_v7 = vmax.f32 %v707_v62, 0.0  ;;  %v1038_v62 = vld [vmem:[%s2084_s4 + $0x20] sm:$0xff] }
 0x1db   :  { %v856_v8 = vmax.f32 %v709_v2, 0.0  ;;  %v1043_v2 = vld [vmem:[%s2084_s4 + $0x48] sm:$0xff] }
 0x1dc   :  { %v1360_v3 = vpack.c.bf16 %v855_v7, %v853_v5  ;;  %v1045_v5 = vld [vmem:[%s2084_s4 + $0x58] sm:$0xff]  ;;  %v1380_v7 = vpack.c.bf16 %v1040_v0, %v1038_v62  ;;  %v1080_v62 = vld [vmem:[%s2084_s4 + $0x170] sm:$0xff]  ;;  %v1083_v0 = vld [vmem:[%s2084_s4 + $0x188] sm:$0xff] }
 0x1dd   :  { %v1358_v9 = vpack.c.bf16 %v856_v8, %v854_v1  ;;  %v712_v10 = vpop.f32.mrb[116].mxu0  ;;  %v1382_v1 = vpack.c.bf16 %v1045_v5, %v1043_v2  ;;  %v1042_v8 = vld [vmem:[%s2084_s4 + $0x40] sm:$0xff]  ;;  %v1085_v2 = vld [vmem:[%s2084_s4 + $0x198] sm:$0xff] }
 0x1de   :  { %v713_v11 = vadd.f32 %v712_v10, %v1701_v49  ;;  %v714_v12 = vpop.f32.mrb[117].mxu0 }
 0x1df   :  { %v715_v13 = vadd.f32 %v714_v12, %v1705_v50  ;;  %v716_v63 = vpop.f32.mrb[118].mxu0  ;;  %1359 = vmatprep.subr.bf16.mxu1 %v1358_v9  ;;  %v1047_v9 = vld [vmem:[%s2084_s4 + $0x68] sm:$0xff]  ;;  %v1046_v12 = vld [vmem:[%s2084_s4 + $0x60] sm:$0xff] }
 0x1e0   :  { %v717_v14 = vadd.f32 %v716_v63, %v1701_v49  ;;  %v718_v15 = vpop.f32.mrb[119].mxu0  ;;  %1361 = vmatpush1.bf16.msra.mxu1 %v1360_v3  ;;  %v857_v17 = vmax.f32 %v713_v11, 0.0  ;;  %v1044_v3 = vld [vmem:[%s2084_s4 + $0x50] sm:$0xff]  ;;  %v1051_v63 = vld [vmem:[%s2084_s4 + $0x88] sm:$0xff] }
 0x1e1   :  { %v719_v16 = vadd.f32 %v718_v15, %v1705_v50  ;;  %v858_v19 = vmax.f32 %v715_v13, 0.0  ;;  %v1384_v10 = vpack.c.bf16 %v1044_v3, %v1042_v8  ;;  %v1048_v13 = vld [vmem:[%s2084_s4 + $0x70] sm:$0xff]  ;;  %v1087_v3 = vld [vmem:[%s2084_s4 + $0x1a8] sm:$0xff] }
 0x1e2   :  { %v859_v18 = vmax.f32 %v717_v14, 0.0  ;;  %v1053_v14 = vld [vmem:[%s2084_s4 + $0x98] sm:$0xff]  ;;  %v1388_v15 = vpack.c.bf16 %v1048_v13, %v1046_v12  ;;  %v1084_v8 = vld [vmem:[%s2084_s4 + $0x190] sm:$0xff]  ;;  %v1091_v13 = vld [vmem:[%s2084_s4 + $0x1c8] sm:$0xff] }
 0x1e3   :  { %v860_v20 = vmax.f32 %v719_v16, 0.0  ;;  %v1390_v16 = vpack.c.bf16 %v1053_v14, %v1051_v63  ;;  %v1088_v12 = vld [vmem:[%s2084_s4 + $0x1b0] sm:$0xff]  ;;  %v1093_v63 = vld [vmem:[%s2084_s4 + $0x1d8] sm:$0xff] }
 0x1e4   :  { %v1364_v21 = vpack.c.bf16 %v859_v18, %v857_v17  ;;  %v1050_v17 = vld [vmem:[%s2084_s4 + $0x80] sm:$0xff]  ;;  %v1052_v18 = vld [vmem:[%s2084_s4 + $0x90] sm:$0xff] }
 0x1e5   :  { %v1362_v22 = vpack.c.bf16 %v860_v20, %v858_v19  ;;  %v722_v23 = vpop.f32.mrb[120].mxu0  ;;  %v1055_v19 = vld [vmem:[%s2084_s4 + $0xa8] sm:$0xff]  ;;  %v1057_v20 = vld [vmem:[%s2084_s4 + $0xb8] sm:$0xff] }
 0x1e6   :  { %v723_v24 = vadd.f32 %v722_v23, %v1701_v49  ;;  %v724_v6 = vpop.f32.mrb[121].mxu0  ;;  %v1054_v23 = vld [vmem:[%s2084_s4 + $0xa0] sm:$0xff] }
 0x1e7   :  { %v725_v25 = vadd.f32 %v724_v6, %v1705_v50  ;;  %v726_v26 = vpop.f32.mrb[122].mxu0  ;;  %1363 = vmatprep.subr.bf16.mxu1 %v1362_v22  ;;  %v1394_v22 = vpack.c.bf16 %v1057_v20, %v1055_v19  ;;  %v1059_v6 = vld [vmem:[%s2084_s4 + $0xc8] sm:$0xff]  ;;  %v1097_v19 = vld [vmem:[%s2084_s4 + $0x1f8] sm:$0xff] }
 0x1e8   :  { %v727_v27 = vadd.f32 %v726_v26, %v1701_v49  ;;  %v728_v28 = vpop.f32.mrb[123].mxu0  ;;  %1365 = vmatpush1.bf16.msra.mxu1 %v1364_v21  ;;  %v861_v30 = vmax.f32 %v723_v24, 0.0  ;;  %v1392_v21 = vpack.c.bf16 %v1052_v18, %v1050_v17  ;;  %v1056_v24 = vld [vmem:[%s2084_s4 + $0xb0] sm:$0xff]  ;;  %v1095_v18 = vld [vmem:[%s2084_s4 + $0x1e8] sm:$0xff] }
 0x1e9   :  { %v729_v29 = vadd.f32 %v728_v28, %v1705_v50  ;;  %v862_v32 = vmax.f32 %v725_v25, 0.0  ;;  %v1061_v25 = vld [vmem:[%s2084_s4 + $0xd8] sm:$0xff]  ;;  %v1396_v26 = vpack.c.bf16 %v1056_v24, %v1054_v23  ;;  %v1058_v28 = vld [vmem:[%s2084_s4 + $0xc0] sm:$0xff]  ;;  %v1092_v17 = vld [vmem:[%s2084_s4 + $0x1d0] sm:$0xff] }
 0x1ea   :  { %v863_v31 = vmax.f32 %v727_v27, 0.0  ;;  %v1398_v27 = vpack.c.bf16 %v1061_v25, %v1059_v6  ;;  %v1096_v23 = vld [vmem:[%s2084_s4 + $0x1f0] sm:$0xff] }
 0x1eb   :  { %v864_v33 = vmax.f32 %v729_v29, 0.0  ;;  %v1060_v29 = vld [vmem:[%s2084_s4 + $0xd0] sm:$0xff] }
 0x1ec   :  { %v1368_v34 = vpack.c.bf16 %v863_v31, %v861_v30  ;;  %v1063_v30 = vld [vmem:[%s2084_s4 + $0xe8] sm:$0xff]  ;;  %v1065_v31 = vld [vmem:[%s2084_s4 + $0xf8] sm:$0xff] }
 0x1ed   :  { %v1366_v35 = vpack.c.bf16 %v864_v33, %v862_v32  ;;  %v732_v36 = vpop.f32.mrb[124].mxu0  ;;  %v1400_v32 = vpack.c.bf16 %v1060_v29, %v1058_v28  ;;  %v1402_v33 = vpack.c.bf16 %v1065_v31, %v1063_v30 }
 0x1ee   :  { %v733_v37 = vadd.f32 %v732_v36, %v1701_v49  ;;  %v734_v38 = vpop.f32.mrb[125].mxu0  ;;  %v1067_v36 = vld [vmem:[%s2084_s4 + $0x108] sm:$0xff] }
 0x1ef   :  { %v735_v39 = vadd.f32 %v734_v38, %v1705_v50  ;;  %v736_v40 = vpop.f32.mrb[126].mxu0  ;;  %1367 = vmatprep.subr.bf16.mxu1 %v1366_v35  ;;  %v1064_v35 = vld [vmem:[%s2084_s4 + $0xf0] sm:$0xff] }
 0x1f0   :  { %v737_v41 = vadd.f32 %v736_v40, %v1701_v49  ;;  %v738_v42 = vpop.f32.mrb[127].mxu0  ;;  %1369 = vmatpush1.bf16.msra.mxu1 %v1368_v34  ;;  %v865_v45 = vmax.f32 %v733_v37, 0.0  ;;  %v1034_v49 = vld [vmem:[%s2084_s4] sm:$0xff]  ;;  %v1069_v37 = vld [vmem:[%s2084_s4 + $0x118] sm:$0xff] }
 0x1f1   :  { %v739_v43 = vadd.f32 %v738_v42, %v1705_v50  ;;  %v866_v53 = vmax.f32 %v735_v39, 0.0  ;;  %v1036_v50 = vld [vmem:[%s2084_s4 + $0x10] sm:$0xff]  ;;  %v1062_v34 = vld [vmem:[%s2084_s4 + $0xe0] sm:$0xff]  ;;  %v1406_v39 = vpack.c.bf16 %v1069_v37, %v1067_v36  ;;  %v1071_v42 = vld [vmem:[%s2084_s4 + $0x128] sm:$0xff] }
 0x1f2   :  { %v867_v47 = vmax.f32 %v737_v41, 0.0  ;;  %v1376_v60 = vpack.c.bf16 %v1036_v50, %v1034_v49  ;;  %v1404_v38 = vpack.c.bf16 %v1064_v35, %v1062_v34  ;;  %v1066_v40 = vld [vmem:[%s2084_s4 + $0x100] sm:$0xff]  ;;  %v1068_v41 = vld [vmem:[%s2084_s4 + $0x110] sm:$0xff]  ;;  %v1079_v50 = vld [vmem:[%s2084_s4 + $0x168] sm:$0xff] }
 0x1f3   :  { %v868_v54 = vmax.f32 %v739_v43, 0.0  ;;  %v1073_v43 = vld [vmem:[%s2084_s4 + $0x138] sm:$0xff]  ;;  %v1076_v49 = vld [vmem:[%s2084_s4 + $0x150] sm:$0xff] }
 0x1f4   :  { %v1372_v55 = vpack.c.bf16 %v867_v47, %v865_v45  ;;  %v1408_v45 = vpack.c.bf16 %v1068_v41, %v1066_v40  ;;  %v1410_v47 = vpack.c.bf16 %v1073_v43, %v1071_v42 }
 0x1f5   :  { %v1370_v56 = vpack.c.bf16 %v868_v54, %v866_v53  ;;  %v1075_v53 = vld [vmem:[%s2084_s4 + $0x148] sm:$0xff]  ;;  %v1077_v54 = vld [vmem:[%s2084_s4 + $0x158] sm:$0xff] }
 0x1f7   :  { %1371 = vmatprep.subr.bf16.mxu1 %v1370_v56  ;;  %v1414_v56 = vpack.c.bf16 %v1077_v54, %v1075_v53 }
 0x1f8   :  { %1373 = vmatpush1.bf16.msra.mxu1 %v1372_v55  ;;  %v1412_v55 = vpack.c.bf16 %v1072_v52, %v1070_v51 }
 0x1f9   :  { %1375 = vmatprep.subr.bf16.mxu1 %v1374_v57  ;;  %v1074_v57 = vld [vmem:[%s2084_s4 + $0x140] sm:$0xff] }
 0x1fa   :  { %v1416_v59 = vpack.c.bf16 %v1076_v49, %v1074_v57 }
 0x1fb   :  { %1028 = vmatmul.mubr.f32.vlgmr.msra.gmra.mrb[0].mxu1 %v1809_v4  ;;  %v1049_v4 = vld [vmem:[%s2084_s4 + $0x78] sm:$0xff] }
 0x1fc   :  { %1377 = vmatpush1.bf16.msra.mxu1 %v1376_v60  ;;  %v1386_v11 = vpack.c.bf16 %v1049_v4, %v1047_v9  ;;  %v1418_v60 = vpack.c.bf16 %v1081_v58, %v1079_v50  ;;  %v1089_v9 = vld [vmem:[%s2084_s4 + $0x1b8] sm:$0xff] }
 0x1fd   :  { %1379 = vmatprep.subr.bf16.mxu1 %v1378_v61  ;;  %v1078_v61 = vld [vmem:[%s2084_s4 + $0x160] sm:$0xff] }
 0x1fe   :  { %v1420_v5 = vpack.c.bf16 %v1080_v62, %v1078_v61 }
 0x200   :  { %1381 = vmatpush1.bf16.msra.mxu1 %v1380_v7  ;;  %v1422_v7 = vpack.c.bf16 %v1085_v2, %v1083_v0 }
 0x201   :  { %1383 = vmatprep.subr.bf16.mxu1 %v1382_v1  ;;  %v1082_v1 = vld [vmem:[%s2084_s4 + $0x180] sm:$0xff] }
 0x202   :  { %v1424_v4 = vpack.c.bf16 %v1084_v8, %v1082_v1 }
 0x204   :  { %1385 = vmatpush1.bf16.msra.mxu1 %v1384_v10  ;;  %v1426_v10 = vpack.c.bf16 %v1089_v9, %v1087_v3 }
 0x205   :  { %1387 = vmatprep.subr.bf16.mxu1 %v1386_v11  ;;  %v1086_v11 = vld [vmem:[%s2084_s4 + $0x1a0] sm:$0xff] }
 0x206   :  { %v1428_v14 = vpack.c.bf16 %v1088_v12, %v1086_v11 }
 0x208   :  { %1389 = vmatpush1.bf16.msra.mxu1 %v1388_v15  ;;  %v1430_v15 = vpack.c.bf16 %v1093_v63, %v1091_v13 }
 0x209   :  { %1391 = vmatprep.subr.bf16.mxu1 %v1390_v16  ;;  %v1090_v16 = vld [vmem:[%s2084_s4 + $0x1c0] sm:$0xff] }
 0x20a   :  { %v1432_v20 = vpack.c.bf16 %v1092_v17, %v1090_v16 }
 0x20c   :  { %1393 = vmatpush1.bf16.msra.mxu1 %v1392_v21  ;;  %v1434_v21 = vpack.c.bf16 %v1097_v19, %v1095_v18 }
 0x20d   :  { %1395 = vmatprep.subr.bf16.mxu1 %v1394_v22  ;;  %v1094_v22 = vld [vmem:[%s2084_s4 + $0x1e0] sm:$0xff] }
 0x20e   :  { %v1436_v24 = vpack.c.bf16 %v1096_v23, %v1094_v22 }
 0x210   :  { %1397 = vmatpush1.bf16.msra.mxu1 %v1396_v26  ;;  %v1098_v26 = vld [vmem:[%s2085_s5] sm:$0x3] }
 0x211   :  { %1399 = vmatprep.subr.bf16.mxu1 %v1398_v27  ;;  %v1103_v27 = vrot.slane %v1098_v26, %v108_v46  ;;  %v1107_v28 = vrot.slane %v1098_v26, %v112_v48 }
 0x214   :  { %1401 = vmatpush1.bf16.msra.mxu1 %v1400_v32 }
 0x215   :  { %1403 = vmatprep.subr.bf16.mxu1 %v1402_v33 }
 0x218   :  { %1405 = vmatpush1.bf16.msra.mxu1 %v1404_v38 }
 0x219   :  { %1407 = vmatprep.subr.bf16.mxu1 %v1406_v39 }
 0x21c   :  { %1409 = vmatpush1.bf16.msra.mxu1 %v1408_v45 }
 0x21d   :  { %1411 = vmatprep.subr.bf16.mxu1 %v1410_v47 }
 0x220   :  { %1413 = vmatpush1.bf16.msra.mxu1 %v1412_v55 }
 0x221   :  { %1415 = vmatprep.subr.bf16.mxu1 %v1414_v56 }
 0x224   :  { %1417 = vmatpush1.bf16.msra.mxu1 %v1416_v59 }
 0x225   :  { %1419 = vmatprep.subr.bf16.mxu1 %v1418_v60 }
 0x228   :  { %1421 = vmatpush1.bf16.msra.mxu1 %v1420_v5 }
 0x229   :  { %1423 = vmatprep.subr.bf16.mxu1 %v1422_v7 }
 0x22c   :  { %1425 = vmatpush1.bf16.msra.mxu1 %v1424_v4 }
 0x22d   :  { %1427 = vmatprep.subr.bf16.mxu1 %v1426_v10 }
 0x230   :  { %1429 = vmatpush1.bf16.msra.mxu1 %v1428_v14 }
 0x231   :  { %1431 = vmatprep.subr.bf16.mxu1 %v1430_v15 }
 0x234   :  { %1433 = vmatpush1.bf16.msra.mxu1 %v1432_v20 }
 0x235   :  { %1435 = vmatprep.subr.bf16.mxu1 %v1434_v21 }
 0x238   :  { %1437 = vmatpush1.bf16.msra.mxu1 %v1436_v24 }
 0x2ce   :  { %v1029_v6 = vpop.f32.mrb[0].mxu1 }
 0x2cf   :  { %v1031_v25 = vpop.f32.mrb[1].mxu1 }
 0x2d0   :  { %1174 = vmatprep.mubr.f32.mxu1 %v1031_v25 }
 0x2d1   :  { %1175 = vmatmul.mubr.f32.vlgmr.msra.gmra.mrb[2].mxu1 %v1029_v6 }
 0x3a4   :  { %v1176_v29 = vpop.f32.mrb[2].mxu1 }
 0x3a5   :  { %v1177_v30 = vadd.f32 %v1176_v29, %v1103_v27  ;;  %v1178_v31 = vpop.f32.mrb[3].mxu1 }
 0x3a6   :  { %v1179_v32 = vadd.f32 %v1178_v31, %v1107_v28 }
 0x3a8   :  { %v1183_v33 = vcombine.low %v1177_v30, %v1179_v32 }
 0x3aa   :  { %1245 = vst.sshfl [vmem:[%s2086_s6] sm:$0x33 pattern:$0x76325410] %v1183_v33 }

// kernel: _lambda_.3
= control target key start
LH: loop header
LB: loop body
LE: loop exit
PB: predicated region body
PF: predicated region fallthrough
CT: control target
= control target key end

     0   :  { %s3176_s0 = inlined_call_operand.vmem [shape: bf16[512,128], index: 0, kind: input, shape index: {}]   ;;  %s3177_s1 = inlined_call_operand.vmem [shape: bf16[128,128], index: 1, kind: input, shape index: {}]   ;;  %s3178_s2 = inlined_call_operand.vmem [shape: f32[1,128], index: 2, kind: input, shape index: {}, may-alias: {2,7}]   ;;  %s3179_s3 = inlined_call_operand.vmem [shape: f32[2,512], index: 3, kind: input, shape index: {}]   ;;  %s3180_s4 = inlined_call_operand.vmem [shape: f32[128,512], index: 4, kind: input, shape index: {}]   ;;  %s3181_s5 = inlined_call_operand.vmem [shape: f32[1,512], index: 5, kind: input, shape index: {}]   ;;  %s3182_s6 = inlined_call_operand.vmem [shape: f32[512,128], index: 6, kind: input, shape index: {}]   ;;  %s3183_s7 = inlined_call_operand.vmem [shape: f32[1,128], index: 7, kind: input, shape index: {}, may-alias: {2,7}]   ;;  %s3184_s8 = inlined_call_operand.vmem [shape: f32[128,384], index: 8, kind: input, shape index: {}]   ;;  %s3185_s9 = inlined_call_operand.vmem [shape: f32[1,384], index: 9, kind: input, shape index: {}]   ;;  %s3186_s10 = inlined_call_operand.hbm [shape: f32[2,384], index: 10, kind: output, shape index: {}]  }
   0x1   :  { %v2188_v0 = vld [vmem:[%s3177_s1] sm:$0xff]   ;;  %v2189_v1 = vld [vmem:[%s3177_s1 + $0x8] sm:$0xff]   ;;  %v2190_v2 = vld [vmem:[%s3177_s1 + $0x10] sm:$0xff]  }
   0x2   :  { %1820 = vmatprep.subr.bf16.mxu0 %v2188_v0  ;;  %v2191_v3 = vld [vmem:[%s3177_s1 + $0x18] sm:$0xff]   ;;  %v2196_v4 = vld [vmem:[%s3176_s0] sm:$0xff]   ;;  %v2193_v6 = vld [vmem:[%s3177_s1 + $0x28] sm:$0xff]  }
   0x3   :  { %1821 = vmatpush3.bf16.msra.mxu0 %v2188_v0  ;;  %1836 = vmatprep.mubr.bf16.mxu0 %v2196_v4  ;;  %v2192_v5 = vld [vmem:[%s3177_s1 + $0x20] sm:$0xff]   ;;  %v2194_v7 = vld [vmem:[%s3177_s1 + $0x30] sm:$0xff]   ;;  %v2195_v8 = vld [vmem:[%s3177_s1 + $0x38] sm:$0xff]  }
   0x4   :  { %1822 = vmatprep.subr.bf16.mxu0 %v2189_v1  ;;  %v2197_v9 = vld [vmem:[%s3176_s0 + $0x8] sm:$0xff]   ;;  %v2198_v10 = vld [vmem:[%s3176_s0 + $0x10] sm:$0xff]   ;;  %v2199_v11 = vld [vmem:[%s3176_s0 + $0x18] sm:$0xff]  }
   0x5   :  { %v2200_v12 = vld [vmem:[%s3176_s0 + $0x20] sm:$0xff]  }
   0x7   :  { %1823 = vmatpush3.bf16.msra.mxu0 %v2189_v1 }
   0x8   :  { %1824 = vmatprep.subr.bf16.mxu0 %v2190_v2 }
   0xb   :  { %1825 = vmatpush3.bf16.msra.mxu0 %v2190_v2 }
   0xc   :  { %1826 = vmatprep.subr.bf16.mxu0 %v2191_v3 }
   0xf   :  { %1827 = vmatpush3.bf16.msra.mxu0 %v2191_v3 }
  0x10   :  { %1828 = vmatprep.subr.bf16.mxu0 %v2192_v5 }
  0x13   :  { %1829 = vmatpush3.bf16.msra.mxu0 %v2192_v5 }
  0x14   :  { %1830 = vmatprep.subr.bf16.mxu0 %v2193_v6 }
  0x17   :  { %1831 = vmatpush3.bf16.msra.mxu0 %v2193_v6 }
  0x18   :  { %1832 = vmatprep.subr.bf16.mxu0 %v2194_v7 }
  0x1b   :  { %1833 = vmatpush3.bf16.msra.mxu0 %v2194_v7 }
  0x1c   :  { %1834 = vmatprep.subr.bf16.mxu0 %v2195_v8 }
  0x1f   :  { %1835 = vmatpush3.bf16.msra.mxu0 %v2195_v8 }
  0x22   :  { %1837 = vmatmul.mubr.bf16.vlgmr.msra.gmra.mrb[0].mxu0 %v2197_v9 }
  0x23   :  { %1840 = vmatprep.mubr.bf16.mxu0 %v2198_v10 }
  0x24   :  { %15 = vsyncpa [#allocation3], 0  ;;  %v2201_v13 = vld [vmem:[%s3176_s0 + $0x28] sm:$0xff]   ;;  %v2202_v14 = vld [vmem:[%s3176_s0 + $0x30] sm:$0xff]   ;;  %v2255_v40 = vmov 1983009808   ;;  %v723_v42 = vlaneseq }
  0x25   :  { %v2203_v15 = vld [vmem:[%s3176_s0 + $0x38] sm:$0xff]   ;;  %v2204_v16 = vld [vmem:[%s3176_s0 + $0x40] sm:$0xff]   ;;  %v2205_v17 = vld [vmem:[%s3176_s0 + $0x48] sm:$0xff]   ;;  %v721_v41 = vunpack.c.l.s4 %v2255_v40  ;;  %vm1112_vm0 = vcmask 1041408   ;;  %vm2258_vm1 = vmmov 0  }
  0x26   :  { %v2206_v18 = vld [vmem:[%s3176_s0 + $0x50] sm:$0xff]   ;;  %v2207_v19 = vld [vmem:[%s3176_s0 + $0x58] sm:$0xff]   ;;  %v2208_v20 = vld [vmem:[%s3176_s0 + $0x60] sm:$0xff]   ;;  %v2435_v44 = vshrl.u32 %v723_v42, 7 }
  0x27   :  { %v2209_v21 = vld [vmem:[%s3176_s0 + $0x68] sm:$0xff]   ;;  %v2210_v22 = vld [vmem:[%s3176_s0 + $0x70] sm:$0xff]   ;;  %v2211_v23 = vld [vmem:[%s3176_s0 + $0x78] sm:$0xff]   ;;  %v722_v43 = vunpack.c.0.s8 %v721_v41 }
  0x28   :  { %v2212_v24 = vld [vmem:[%s3176_s0 + $0x80] sm:$0xff]   ;;  %v2213_v25 = vld [vmem:[%s3176_s0 + $0x88] sm:$0xff]   ;;  %v2214_v26 = vld [vmem:[%s3176_s0 + $0x90] sm:$0xff]  }
  0x29   :  { %v2215_v27 = vld [vmem:[%s3176_s0 + $0x98] sm:$0xff]   ;;  %v2216_v28 = vld [vmem:[%s3176_s0 + $0xa0] sm:$0xff]   ;;  %v2217_v29 = vld [vmem:[%s3176_s0 + $0xa8] sm:$0xff]   ;;  %v2438_v45 = vsub.s32 %v722_v43, %v2435_v44 }
  0x2a   :  { %1841 = vmatmul.mubr.bf16.gmra.mrb[4].mxu0 %v2199_v11  ;;  %v2218_v30 = vld [vmem:[%s3176_s0 + $0xb0] sm:$0xff]   ;;  %v2219_v31 = vld [vmem:[%s3176_s0 + $0xb8] sm:$0xff]   ;;  %v2220_v32 = vld [vmem:[%s3176_s0 + $0xc0] sm:$0xff]  }
  0x2b   :  { %1844 = vmatprep.mubr.bf16.mxu0 %v2200_v12  ;;  %v2221_v33 = vld [vmem:[%s3176_s0 + $0xc8] sm:$0xff]   ;;  %v2222_v34 = vld [vmem:[%s3176_s0 + $0xd0] sm:$0xff]   ;;  %v2223_v35 = vld [vmem:[%s3176_s0 + $0xd8] sm:$0xff]  }
  0x2c   :  { %v2224_v36 = vld [vmem:[%s3176_s0 + $0xe0] sm:$0xff]   ;;  %v2225_v37 = vld [vmem:[%s3176_s0 + $0xe8] sm:$0xff]   ;;  %v2226_v38 = vld [vmem:[%s3176_s0 + $0xf0] sm:$0xff]  }
  0x2d   :  { %v2227_v39 = vld [vmem:[%s3176_s0 + $0xf8] sm:$0xff]   ;;  %v2443_v46 = vld [vmem:[%s3179_s3] sm:$0xff] }
  0x2e   :  { %v2447_v47 = vrot.slane %v2443_v46, %v2438_v45  ;;  %v2454_v49 = vld [vmem:[%s3178_s2] ss:$0 sm:$0xff] }
  0x30   :  { %v734_v48 = vcombine.high %v2447_v47, %v2447_v47 }
  0x32   :  { %1845 = vmatmul.mubr.bf16.gmra.mrb[8].mxu0 %v2201_v13  ;;  %804 = vmatprep.mubr.f32.mxu1 %v734_v48 }
  0x33   :  { %1848 = vmatprep.mubr.bf16.mxu0 %v2202_v14 }
  0x3a   :  { %1849 = vmatmul.mubr.bf16.gmra.mrb[12].mxu0 %v2203_v15 }
  0x3b   :  { %1852 = vmatprep.mubr.bf16.mxu0 %v2204_v16 }
  0x42   :  { %1853 = vmatmul.mubr.bf16.gmra.mrb[16].mxu0 %v2205_v17 }
  0x43   :  { %1856 = vmatprep.mubr.bf16.mxu0 %v2206_v18 }
  0x4a   :  { %1857 = vmatmul.mubr.bf16.gmra.mrb[20].mxu0 %v2207_v19 }
  0x4b   :  { %1860 = vmatprep.mubr.bf16.mxu0 %v2208_v20 }
  0x52   :  { %1861 = vmatmul.mubr.bf16.gmra.mrb[24].mxu0 %v2209_v21 }
  0x53   :  { %1864 = vmatprep.mubr.bf16.mxu0 %v2210_v22 }
  0x5a   :  { %1865 = vmatmul.mubr.bf16.gmra.mrb[28].mxu0 %v2211_v23 }
  0x5b   :  { %1868 = vmatprep.mubr.bf16.mxu0 %v2212_v24 }
  0x62   :  { %1869 = vmatmul.mubr.bf16.gmra.mrb[32].mxu0 %v2213_v25 }
  0x63   :  { %1872 = vmatprep.mubr.bf16.mxu0 %v2214_v26 }
  0x6a   :  { %1873 = vmatmul.mubr.bf16.gmra.mrb[36].mxu0 %v2215_v27 }
  0x6b   :  { %1876 = vmatprep.mubr.bf16.mxu0 %v2216_v28 }
  0x72   :  { %1877 = vmatmul.mubr.bf16.gmra.mrb[40].mxu0 %v2217_v29 }
  0x73   :  { %1880 = vmatprep.mubr.bf16.mxu0 %v2218_v30 }
  0x7a   :  { %1881 = vmatmul.mubr.bf16.gmra.mrb[44].mxu0 %v2219_v31 }
  0x7b   :  { %1884 = vmatprep.mubr.bf16.mxu0 %v2220_v32 }
  0x82   :  { %1885 = vmatmul.mubr.bf16.gmra.mrb[48].mxu0 %v2221_v33 }
  0x83   :  { %1888 = vmatprep.mubr.bf16.mxu0 %v2222_v34 }
  0x8a   :  { %1889 = vmatmul.mubr.bf16.gmra.mrb[52].mxu0 %v2223_v35 }
  0x8b   :  { %1892 = vmatprep.mubr.bf16.mxu0 %v2224_v36 }
  0x92   :  { %1893 = vmatmul.mubr.bf16.gmra.mrb[56].mxu0 %v2225_v37 }
  0x93   :  { %1896 = vmatprep.mubr.bf16.mxu0 %v2226_v38 }
  0x9a   :  { %1897 = vmatmul.mubr.bf16.gmra.mrb[60].mxu0 %v2227_v39 }
  0xf5   :  { %v1838_v50 = vpop.f32.mrb[0].mxu0 }
  0xf6   :  { %v407_v51 = vadd.f32 %v1838_v50, %v2454_v49  ;;  %v398_v52 = vpop.f32.mrb[1].mxu0 }
  0xf7   :  { %v399_v53 = vadd.f32 %v2454_v49, %v398_v52  ;;  %v1839_v54 = vpop.f32.mrb[2].mxu0 }
  0xf8   :  { %v410_v55 = vadd.f32 %v1839_v54, %v2454_v49  ;;  %v401_v56 = vpop.f32.mrb[3].mxu0  ;;  %v655_v58 = vmax.f32 %v407_v51, 0.0 }
  0xf9   :  { %v402_v57 = vadd.f32 %v2454_v49, %v401_v56  ;;  %v653_v60 = vmax.f32 %v399_v53, 0.0 }
  0xfa   :  { %v656_v59 = vmax.f32 %v410_v55, 0.0 }
  0xfb   :  { %v654_v61 = vmax.f32 %v402_v57, 0.0 }
  0xfc   :  { %v2460_v62 = vpack.c.bf16 %v656_v59, %v655_v58 }
  0xfd   :  { %v1842_v63 = vpop.f32.mrb[4].mxu0  ;;  %v2462_v0 = vpack.c.bf16 %v654_v61, %v653_v60 }
  0xfe   :  { %v423_v1 = vadd.f32 %v1842_v63, %v2454_v49  ;;  %v414_v2 = vpop.f32.mrb[5].mxu0 }
  0xff   :  { %v415_v3 = vadd.f32 %v2454_v49, %v414_v2  ;;  %v1843_v4 = vpop.f32.mrb[6].mxu0 }
 0x100   :  { %v426_v5 = vadd.f32 %v1843_v4, %v2454_v49  ;;  %v417_v6 = vpop.f32.mrb[7].mxu0  ;;  %v659_v8 = vmax.f32 %v423_v1, 0.0 }
 0x101   :  { %v418_v7 = vadd.f32 %v2454_v49, %v417_v6  ;;  %v657_v10 = vmax.f32 %v415_v3, 0.0 }
 0x102   :  { %v660_v9 = vmax.f32 %v426_v5, 0.0 }
 0x103   :  { %v658_v11 = vmax.f32 %v418_v7, 0.0 }
 0x104   :  { %v2468_v12 = vpack.c.bf16 %v660_v9, %v659_v8 }
 0x105   :  { %v2470_v13 = vpack.c.bf16 %v658_v11, %v657_v10  ;;  %v1846_v14 = vpop.f32.mrb[8].mxu0 }
 0x106   :  { %v439_v15 = vadd.f32 %v1846_v14, %v2454_v49  ;;  %v430_v16 = vpop.f32.mrb[9].mxu0 }
 0x107   :  { %v431_v17 = vadd.f32 %v2454_v49, %v430_v16  ;;  %v1847_v18 = vpop.f32.mrb[10].mxu0 }
 0x108   :  { %v442_v19 = vadd.f32 %v1847_v18, %v2454_v49  ;;  %v433_v20 = vpop.f32.mrb[11].mxu0  ;;  %v663_v22 = vmax.f32 %v439_v15, 0.0 }
 0x109   :  { %v434_v21 = vadd.f32 %v2454_v49, %v433_v20  ;;  %v661_v24 = vmax.f32 %v431_v17, 0.0 }
 0x10a   :  { %v664_v23 = vmax.f32 %v442_v19, 0.0 }
 0x10b   :  { %v662_v25 = vmax.f32 %v434_v21, 0.0 }
 0x10c   :  { %v2476_v26 = vpack.c.bf16 %v664_v23, %v663_v22 }
 0x10d   :  { %v2478_v27 = vpack.c.bf16 %v662_v25, %v661_v24  ;;  %v1850_v28 = vpop.f32.mrb[12].mxu0 }
 0x10e   :  { %v455_v29 = vadd.f32 %v1850_v28, %v2454_v49  ;;  %v446_v30 = vpop.f32.mrb[13].mxu0 }
 0x10f   :  { %v447_v31 = vadd.f32 %v2454_v49, %v446_v30  ;;  %v1851_v32 = vpop.f32.mrb[14].mxu0 }
 0x110   :  { %v458_v33 = vadd.f32 %v1851_v32, %v2454_v49  ;;  %v449_v34 = vpop.f32.mrb[15].mxu0  ;;  %v667_v36 = vmax.f32 %v455_v29, 0.0 }
 0x111   :  { %v450_v35 = vadd.f32 %v2454_v49, %v449_v34  ;;  %v665_v38 = vmax.f32 %v447_v31, 0.0 }
 0x112   :  { %v668_v37 = vmax.f32 %v458_v33, 0.0 }
 0x113   :  { %v666_v39 = vmax.f32 %v450_v35, 0.0 }
 0x114   :  { %v2484_v40 = vpack.c.bf16 %v668_v37, %v667_v36 }
 0x115   :  { %v2486_v41 = vpack.c.bf16 %v666_v39, %v665_v38  ;;  %v1854_v42 = vpop.f32.mrb[16].mxu0 }
 0x116   :  { %v471_v43 = vadd.f32 %v1854_v42, %v2454_v49  ;;  %v462_v48 = vpop.f32.mrb[17].mxu0  ;;  %v719_v42 = vcombine.high %v2443_v46, %v2443_v46 }
 0x117   :  { %v463_v50 = vadd.f32 %v2454_v49, %v462_v48  ;;  %v1855_v51 = vpop.f32.mrb[18].mxu0 }
 0x118   :  { %v474_v52 = vadd.f32 %v1855_v51, %v2454_v49  ;;  %v465_v53 = vpop.f32.mrb[19].mxu0  ;;  %v671_v55 = vmax.f32 %v471_v43, 0.0 }
 0x119   :  { %v466_v54 = vadd.f32 %v2454_v49, %v465_v53  ;;  %v669_v57 = vmax.f32 %v463_v50, 0.0 }
 0x11a   :  { %v672_v56 = vmax.f32 %v474_v52, 0.0 }
 0x11b   :  { %v670_v58 = vmax.f32 %v466_v54, 0.0 }
 0x11c   :  { %v1939_v59 = vpack.c.bf16 %v672_v56, %v671_v55  ;;  %v2517_v55 = vrot.slane %v719_v42, %v2438_v45 }
 0x11d   :  { %v1858_v60 = vpop.f32.mrb[20].mxu0  ;;  %v1935_v61 = vpack.c.bf16 %v670_v58, %v669_v57 }
 0x11e   :  { %v487_v63 = vadd.f32 %v1858_v60, %v2454_v49  ;;  %v478_v1 = vpop.f32.mrb[21].mxu0  ;;  %v735_v60 = vcombine.high %v2517_v55, %v2517_v55 }
 0x11f   :  { %v479_v2 = vadd.f32 %v2454_v49, %v478_v1  ;;  %v1859_v3 = vpop.f32.mrb[22].mxu0  ;;  %1936 = vmatprep.subr.bf16.mxu1 %v1935_v61 }
 0x120   :  { %v490_v4 = vadd.f32 %v1859_v3, %v2454_v49  ;;  %v481_v5 = vpop.f32.mrb[23].mxu0  ;;  %1938 = vmatpush3.bf16.msra.mxu1 %v2462_v0  ;;  %v675_v7 = vmax.f32 %v487_v63, 0.0 }
 0x121   :  { %v482_v6 = vadd.f32 %v2454_v49, %v481_v5  ;;  %1940 = vmatprep.subr.bf16.mxu1 %v1939_v59  ;;  %v673_v9 = vmax.f32 %v479_v2, 0.0 }
 0x122   :  { %v676_v8 = vmax.f32 %v490_v4, 0.0 }
 0x123   :  { %v674_v10 = vmax.f32 %v482_v6, 0.0 }
 0x124   :  { %v1947_v11 = vpack.c.bf16 %v676_v8, %v675_v7  ;;  %1942 = vmatpush3.bf16.msra.mxu1 %v2460_v62 }
 0x125   :  { %v1943_v14 = vpack.c.bf16 %v674_v10, %v673_v9  ;;  %v1862_v15 = vpop.f32.mrb[24].mxu0 }
 0x126   :  { %v503_v16 = vadd.f32 %v1862_v15, %v2454_v49  ;;  %v494_v17 = vpop.f32.mrb[25].mxu0 }
 0x127   :  { %v495_v18 = vadd.f32 %v2454_v49, %v494_v17  ;;  %v1863_v19 = vpop.f32.mrb[26].mxu0  ;;  %1944 = vmatprep.subr.bf16.mxu1 %v1943_v14 }
 0x128   :  { %v506_v0 = vadd.f32 %v1863_v19, %v2454_v49  ;;  %v497_v20 = vpop.f32.mrb[27].mxu0  ;;  %1946 = vmatpush3.bf16.msra.mxu1 %v2470_v13  ;;  %v679_v22 = vmax.f32 %v503_v16, 0.0 }
 0x129   :  { %v498_v21 = vadd.f32 %v2454_v49, %v497_v20  ;;  %1948 = vmatprep.subr.bf16.mxu1 %v1947_v11  ;;  %v677_v62 = vmax.f32 %v495_v18, 0.0 }
 0x12a   :  { %v680_v23 = vmax.f32 %v506_v0, 0.0 }
 0x12b   :  { %v678_v24 = vmax.f32 %v498_v21, 0.0 }
 0x12c   :  { %v1955_v25 = vpack.c.bf16 %v680_v23, %v679_v22  ;;  %1950 = vmatpush3.bf16.msra.mxu1 %v2468_v12 }
 0x12d   :  { %v1951_v28 = vpack.c.bf16 %v678_v24, %v677_v62  ;;  %v1866_v29 = vpop.f32.mrb[28].mxu0 }
 0x12e   :  { %v519_v30 = vadd.f32 %v1866_v29, %v2454_v49  ;;  %v510_v31 = vpop.f32.mrb[29].mxu0 }
 0x12f   :  { %v511_v32 = vadd.f32 %v2454_v49, %v510_v31  ;;  %v1867_v33 = vpop.f32.mrb[30].mxu0  ;;  %1952 = vmatprep.subr.bf16.mxu1 %v1951_v28 }
 0x130   :  { %v522_v13 = vadd.f32 %v1867_v33, %v2454_v49  ;;  %v513_v34 = vpop.f32.mrb[31].mxu0  ;;  %1954 = vmatpush3.bf16.msra.mxu1 %v2478_v27  ;;  %v683_v36 = vmax.f32 %v519_v30, 0.0 }
 0x131   :  { %v514_v35 = vadd.f32 %v2454_v49, %v513_v34  ;;  %1956 = vmatprep.subr.bf16.mxu1 %v1955_v25  ;;  %v681_v12 = vmax.f32 %v511_v32, 0.0 }
 0x132   :  { %v684_v37 = vmax.f32 %v522_v13, 0.0 }
 0x133   :  { %v682_v38 = vmax.f32 %v514_v35, 0.0 }
 0x134   :  { %v1963_v39 = vpack.c.bf16 %v684_v37, %v683_v36  ;;  %1958 = vmatpush3.bf16.msra.mxu1 %v2476_v26 }
 0x135   :  { %v1959_v43 = vpack.c.bf16 %v682_v38, %v681_v12  ;;  %v1870_v48 = vpop.f32.mrb[32].mxu0 }
 0x136   :  { %v535_v50 = vadd.f32 %v1870_v48, %v2454_v49  ;;  %v526_v51 = vpop.f32.mrb[33].mxu0 }
 0x137   :  { %v527_v27 = vadd.f32 %v2454_v49, %v526_v51  ;;  %v1871_v52 = vpop.f32.mrb[34].mxu0  ;;  %1960 = vmatprep.subr.bf16.mxu1 %v1959_v43 }
 0x138   :  { %v538_v53 = vadd.f32 %v1871_v52, %v2454_v49  ;;  %v529_v54 = vpop.f32.mrb[35].mxu0  ;;  %1962 = vmatpush3.bf16.msra.mxu1 %v2486_v41  ;;  %v687_v46 = vmax.f32 %v535_v50, 0.0 }
 0x139   :  { %v530_v26 = vadd.f32 %v2454_v49, %v529_v54  ;;  %1964 = vmatprep.subr.bf16.mxu1 %v1963_v39  ;;  %v685_v57 = vmax.f32 %v527_v27, 0.0 }
 0x13a   :  { %v688_v56 = vmax.f32 %v538_v53, 0.0 }
 0x13b   :  { %v686_v58 = vmax.f32 %v530_v26, 0.0 }
 0x13c   :  { %v2520_v59 = vpack.c.bf16 %v688_v56, %v687_v46  ;;  %1966 = vmatpush3.bf16.msra.mxu1 %v2484_v40 }
 0x13d   :  { %v2525_v61 = vpack.c.bf16 %v686_v58, %v685_v57  ;;  %v1874_v41 = vpop.f32.mrb[36].mxu0 }
 0x13e   :  { %v551_v63 = vadd.f32 %v1874_v41, %v2454_v49  ;;  %v542_v1 = vpop.f32.mrb[37].mxu0 }
 0x13f   :  { %v543_v2 = vadd.f32 %v2454_v49, %v542_v1  ;;  %v1875_v3 = vpop.f32.mrb[38].mxu0  ;;  %805 = vmatmul.mubr.f32.vlgmr.msra.gmra.mrb[0].mxu1 %v2447_v47 }
 0x140   :  { %v554_v4 = vadd.f32 %v1875_v3, %v2454_v49  ;;  %v545_v5 = vpop.f32.mrb[39].mxu0  ;;  %874 = vmatprep.mubr.f32.mxu1 %v735_v60  ;;  %v691_v6 = vmax.f32 %v551_v63, 0.0 }
 0x141   :  { %v546_v40 = vadd.f32 %v2454_v49, %v545_v5  ;;  %v689_v8 = vmax.f32 %v543_v2, 0.0 }
 0x142   :  { %v692_v7 = vmax.f32 %v554_v4, 0.0 }
 0x143   :  { %v690_v9 = vmax.f32 %v546_v40, 0.0 }
 0x144   :  { %v2532_v10 = vpack.c.bf16 %v692_v7, %v691_v6 }
 0x145   :  { %v2534_v11 = vpack.c.bf16 %v690_v9, %v689_v8  ;;  %v1878_v14 = vpop.f32.mrb[40].mxu0 }
 0x146   :  { %v567_v15 = vadd.f32 %v1878_v14, %v2454_v49  ;;  %v558_v16 = vpop.f32.mrb[41].mxu0 }
 0x147   :  { %v559_v47 = vadd.f32 %v2454_v49, %v558_v16  ;;  %v1879_v17 = vpop.f32.mrb[42].mxu0 }
 0x148   :  { %v570_v18 = vadd.f32 %v1879_v17, %v2454_v49  ;;  %v561_v19 = vpop.f32.mrb[43].mxu0  ;;  %v695_v20 = vmax.f32 %v567_v15, 0.0 }
 0x149   :  { %v562_v0 = vadd.f32 %v2454_v49, %v561_v19  ;;  %v693_v22 = vmax.f32 %v559_v47, 0.0 }
 0x14a   :  { %v696_v21 = vmax.f32 %v570_v18, 0.0 }
 0x14b   :  { %v694_v23 = vmax.f32 %v562_v0, 0.0 }
 0x14c   :  { %v2540_v62 = vpack.c.bf16 %v696_v21, %v695_v20 }
 0x14d   :  { %v2542_v24 = vpack.c.bf16 %v694_v23, %v693_v22  ;;  %v1882_v25 = vpop.f32.mrb[44].mxu0 }
 0x14e   :  { %v583_v28 = vadd.f32 %v1882_v25, %v2454_v49  ;;  %v574_v29 = vpop.f32.mrb[45].mxu0 }
 0x14f   :  { %v575_v30 = vadd.f32 %v2454_v49, %v574_v29  ;;  %v1883_v31 = vpop.f32.mrb[46].mxu0 }
 0x150   :  { %v586_v32 = vadd.f32 %v1883_v31, %v2454_v49  ;;  %v577_v33 = vpop.f32.mrb[47].mxu0  ;;  %v699_v34 = vmax.f32 %v583_v28, 0.0 }
 0x151   :  { %v578_v13 = vadd.f32 %v2454_v49, %v577_v33  ;;  %v697_v36 = vmax.f32 %v575_v30, 0.0 }
 0x152   :  { %v700_v35 = vmax.f32 %v586_v32, 0.0 }
 0x153   :  { %v698_v37 = vmax.f32 %v578_v13, 0.0 }
 0x154   :  { %v2548_v12 = vpack.c.bf16 %v700_v35, %v699_v34 }
 0x155   :  { %v2550_v38 = vpack.c.bf16 %v698_v37, %v697_v36  ;;  %v1886_v39 = vpop.f32.mrb[48].mxu0 }
 0x156   :  { %v599_v42 = vadd.f32 %v1886_v39, %v2454_v49  ;;  %v590_v43 = vpop.f32.mrb[49].mxu0 }
 0x157   :  { %v591_v48 = vadd.f32 %v2454_v49, %v590_v43  ;;  %v1887_v50 = vpop.f32.mrb[50].mxu0 }
 0x158   :  { %v602_v51 = vadd.f32 %v1887_v50, %v2454_v49  ;;  %v593_v27 = vpop.f32.mrb[51].mxu0  ;;  %v703_v53 = vmax.f32 %v599_v42, 0.0  ;;  %v892_v50 = vld [vmem:[%s3180_s4 + $0x60] sm:$0xff] }
 0x159   :  { %v594_v52 = vadd.f32 %v2454_v49, %v593_v27  ;;  %v701_v26 = vmax.f32 %v591_v48, 0.0  ;;  %v888_v48 = vld [vmem:[%s3180_s4 + $0x40] sm:$0xff]  ;;  %v901_v27 = vld [vmem:[%s3180_s4 + $0xa8] sm:$0xff] }
 0x15a   :  { %v704_v54 = vmax.f32 %v602_v51, 0.0  ;;  %v897_v51 = vld [vmem:[%s3180_s4 + $0x88] sm:$0xff] }
 0x15b   :  { %v702_v46 = vmax.f32 %v594_v52, 0.0  ;;  %v2005_v52 = vpack.c.bf16 %v892_v50, %v888_v48  ;;  %v898_v48 = vld [vmem:[%s3180_s4 + $0x90] sm:$0xff] }
 0x15c   :  { %v1971_v56 = vpack.c.bf16 %v704_v54, %v703_v53  ;;  %v2007_v53 = vpack.c.bf16 %v901_v27, %v897_v51  ;;  %v896_v54 = vld [vmem:[%s3180_s4 + $0x80] sm:$0xff]  ;;  %v902_v50 = vld [vmem:[%s3180_s4 + $0xb0] sm:$0xff]  ;;  %v907_v51 = vld [vmem:[%s3180_s4 + $0xd8] sm:$0xff] }
 0x15d   :  { %v1967_v57 = vpack.c.bf16 %v702_v46, %v701_v26  ;;  %v1890_v58 = vpop.f32.mrb[52].mxu0  ;;  %v900_v26 = vld [vmem:[%s3180_s4 + $0xa0] sm:$0xff]  ;;  %v905_v46 = vld [vmem:[%s3180_s4 + $0xc8] sm:$0xff]  ;;  %v911_v27 = vld [vmem:[%s3180_s4 + $0xf8] sm:$0xff] }
 0x15e   :  { %v615_v60 = vadd.f32 %v1890_v58, %v2454_v49  ;;  %v606_v41 = vpop.f32.mrb[53].mxu0 }
 0x15f   :  { %v607_v63 = vadd.f32 %v2454_v49, %v606_v41  ;;  %v1891_v1 = vpop.f32.mrb[54].mxu0  ;;  %1968 = vmatprep.subr.bf16.mxu1 %v1967_v57  ;;  %v2009_v57 = vpack.c.bf16 %v900_v26, %v896_v54  ;;  %v908_v41 = vld [vmem:[%s3180_s4 + $0xe0] sm:$0xff]  ;;  %v906_v54 = vld [vmem:[%s3180_s4 + $0xd0] sm:$0xff] }
 0x160   :  { %v618_v2 = vadd.f32 %v1891_v1, %v2454_v49  ;;  %v609_v3 = vpop.f32.mrb[55].mxu0  ;;  %1970 = vmatpush3.bf16.msra.mxu1 %v2525_v61  ;;  %v707_v5 = vmax.f32 %v615_v60, 0.0  ;;  %v904_v60 = vld [vmem:[%s3180_s4 + $0xc0] sm:$0xff]  ;;  %v917_v1 = vld [vmem:[%s3180_s4 + $0x128] sm:$0xff]  ;;  %v910_v26 = vld [vmem:[%s3180_s4 + $0xf0] sm:$0xff] }
 0x161   :  { %v610_v4 = vadd.f32 %v2454_v49, %v609_v3  ;;  %1972 = vmatprep.subr.bf16.mxu1 %v1971_v56  ;;  %v705_v6 = vmax.f32 %v607_v63, 0.0  ;;  %v909_v56 = vld [vmem:[%s3180_s4 + $0xe8] sm:$0xff] }
 0x162   :  { %v708_v40 = vmax.f32 %v618_v2, 0.0  ;;  %v2011_v58 = vpack.c.bf16 %v909_v56, %v905_v46  ;;  %v913_v63 = vld [vmem:[%s3180_s4 + $0x108] sm:$0xff]  ;;  %v2013_v2 = vpack.c.bf16 %v908_v41, %v904_v60  ;;  %v915_v46 = vld [vmem:[%s3180_s4 + $0x118] sm:$0xff]  ;;  %v914_v60 = vld [vmem:[%s3180_s4 + $0x110] sm:$0xff] }
 0x163   :  { %v706_v7 = vmax.f32 %v610_v4, 0.0  ;;  %v2015_v3 = vpack.c.bf16 %v917_v1, %v913_v63  ;;  %v912_v4 = vld [vmem:[%s3180_s4 + $0x100] sm:$0xff]  ;;  %v919_v56 = vld [vmem:[%s3180_s4 + $0x138] sm:$0xff]  ;;  %v918_v41 = vld [vmem:[%s3180_s4 + $0x130] sm:$0xff] }
 0x164   :  { %v1979_v8 = vpack.c.bf16 %v708_v40, %v707_v5  ;;  %1974 = vmatpush3.bf16.msra.mxu1 %v2520_v59  ;;  %v916_v5 = vld [vmem:[%s3180_s4 + $0x120] sm:$0xff]  ;;  %v921_v40 = vld [vmem:[%s3180_s4 + $0x148] sm:$0xff]  ;;  %v923_v63 = vld [vmem:[%s3180_s4 + $0x158] sm:$0xff] }
 0x165   :  { %v1975_v9 = vpack.c.bf16 %v706_v7, %v705_v6  ;;  %v1894_v14 = vpop.f32.mrb[56].mxu0  ;;  %v925_v6 = vld [vmem:[%s3180_s4 + $0x168] sm:$0xff]  ;;  %v2017_v7 = vpack.c.bf16 %v916_v5, %v912_v4  ;;  %v927_v1 = vld [vmem:[%s3180_s4 + $0x178] sm:$0xff]  ;;  %v922_v4 = vld [vmem:[%s3180_s4 + $0x150] sm:$0xff] }
 0x166   :  { %v631_v15 = vadd.f32 %v1894_v14, %v2454_v49  ;;  %v622_v16 = vpop.f32.mrb[57].mxu0  ;;  %v924_v14 = vld [vmem:[%s3180_s4 + $0x160] sm:$0xff]  ;;  %v926_v5 = vld [vmem:[%s3180_s4 + $0x170] sm:$0xff] }
 0x167   :  { %v623_v47 = vadd.f32 %v2454_v49, %v622_v16  ;;  %v1895_v17 = vpop.f32.mrb[58].mxu0  ;;  %1976 = vmatprep.subr.bf16.mxu1 %v1975_v9  ;;  %v920_v9 = vld [vmem:[%s3180_s4 + $0x140] sm:$0xff]  ;;  %v933_v16 = vld [vmem:[%s3180_s4 + $0x1a8] sm:$0xff] }
 0x168   :  { %v634_v61 = vadd.f32 %v1895_v17, %v2454_v49  ;;  %v625_v18 = vpop.f32.mrb[59].mxu0  ;;  %1978 = vmatpush3.bf16.msra.mxu1 %v2534_v11  ;;  %v711_v0 = vmax.f32 %v631_v15, 0.0  ;;  %v929_v15 = vld [vmem:[%s3180_s4 + $0x188] sm:$0xff] }
 0x169   :  { %v626_v19 = vadd.f32 %v2454_v49, %v625_v18  ;;  %1980 = vmatprep.subr.bf16.mxu1 %v1979_v8  ;;  %v709_v59 = vmax.f32 %v623_v47, 0.0  ;;  %v2019_v8 = vpack.c.bf16 %v925_v6, %v921_v40  ;;  %v2021_v47 = vpack.c.bf16 %v924_v14, %v920_v9  ;;  %v932_v18 = vld [vmem:[%s3180_s4 + $0x1a0] sm:$0xff]  ;;  %v931_v40 = vld [vmem:[%s3180_s4 + $0x198] sm:$0xff]  ;;  %v930_v9 = vld [vmem:[%s3180_s4 + $0x190] sm:$0xff] }
 0x16a   :  { %v712_v20 = vmax.f32 %v634_v61, 0.0  ;;  %v2023_v17 = vpack.c.bf16 %v933_v16, %v929_v15  ;;  %v928_v61 = vld [vmem:[%s3180_s4 + $0x180] sm:$0xff]  ;;  %v935_v6 = vld [vmem:[%s3180_s4 + $0x1b8] sm:$0xff]  ;;  %v934_v14 = vld [vmem:[%s3180_s4 + $0x1b0] sm:$0xff] }
 0x16b   :  { %v710_v21 = vmax.f32 %v626_v19, 0.0  ;;  %v2025_v19 = vpack.c.bf16 %v932_v18, %v928_v61  ;;  %v939_v15 = vld [vmem:[%s3180_s4 + $0x1d8] sm:$0xff]  ;;  %v938_v61 = vld [vmem:[%s3180_s4 + $0x1d0] sm:$0xff] }
 0x16c   :  { %v1987_v22 = vpack.c.bf16 %v712_v20, %v711_v0  ;;  %1982 = vmatpush3.bf16.msra.mxu1 %v2532_v10  ;;  %v937_v0 = vld [vmem:[%s3180_s4 + $0x1c8] sm:$0xff]  ;;  %v943_v16 = vld [vmem:[%s3180_s4 + $0x1f8] sm:$0xff]  ;;  %v942_v18 = vld [vmem:[%s3180_s4 + $0x1f0] sm:$0xff] }
 0x16d   :  { %v1983_v23 = vpack.c.bf16 %v710_v21, %v709_v59  ;;  %v1898_v25 = vpop.f32.mrb[60].mxu0  ;;  %v941_v20 = vld [vmem:[%s3180_s4 + $0x1e8] sm:$0xff]  ;;  %v936_v21 = vld [vmem:[%s3180_s4 + $0x1c0] sm:$0xff] }
 0x16e   :  { %v647_v28 = vadd.f32 %v1898_v25, %v2454_v49  ;;  %v638_v29 = vpop.f32.mrb[61].mxu0  ;;  %v2027_v59 = vpack.c.bf16 %v941_v20, %v937_v0  ;;  %v883_v25 = vld [vmem:[%s3180_s4 + $0x18] sm:$0xff]  ;;  %v1144_v0 = vld [vmem:[%s3182_s6 + $0x80] sm:$0xff]  ;;  %v1145_v20 = vld [vmem:[%s3182_s6 + $0x88] sm:$0xff] }
 0x16f   :  { %v639_v30 = vadd.f32 %v2454_v49, %v638_v29  ;;  %v1899_v31 = vpop.f32.mrb[62].mxu0  ;;  %1984 = vmatprep.subr.bf16.mxu1 %v1983_v23 }
 0x170   :  { %v650_v11 = vadd.f32 %v1899_v31, %v2454_v49  ;;  %v641_v32 = vpop.f32.mrb[63].mxu0  ;;  %1986 = vmatpush3.bf16.msra.mxu1 %v2542_v24  ;;  %v715_v13 = vmax.f32 %v647_v28, 0.0  ;;  %v885_v24 = vld [vmem:[%s3180_s4 + $0x28] sm:$0xff]  ;;  %v887_v28 = vld [vmem:[%s3180_s4 + $0x38] sm:$0xff] }
 0x171   :  { %v642_v33 = vadd.f32 %v2454_v49, %v641_v32  ;;  %1988 = vmatprep.subr.bf16.mxu1 %v1987_v22  ;;  %v713_v10 = vmax.f32 %v639_v30, 0.0  ;;  %v881_v49 = vld [vmem:[%s3180_s4 + $0x8] sm:$0xff]  ;;  %v940_v22 = vld [vmem:[%s3180_s4 + $0x1e0] sm:$0xff]  ;;  %v2031_v29 = vpack.c.bf16 %v887_v28, %v883_v25  ;;  %v2256_v30 = vmov 0.0   ;;  %v1147_v25 = vld [vmem:[%s3182_s6 + $0x98] sm:$0xff] }
 0x172   :  { %v716_v34 = vmax.f32 %v650_v11, 0.0  ;;  %v1999_v39 = vpack.c.bf16 %v885_v24, %v881_v49  ;;  %v2029_v23 = vpack.c.bf16 %v940_v22, %v936_v21  ;;  %v2063_v21 = vpack.c.bf16 %v1145_v20, %v1144_v0  ;;  %v1129_v22 = vld [vmem:[%s3182_s6 + $0x8] sm:$0xff]  ;;  %v1140_v20 = vld [vmem:[%s3182_s6 + $0x60] sm:$0xff] }
 0x173   :  { %v714_v35 = vmax.f32 %v642_v33, 0.0 }
 0x174   :  { %v1995_v36 = vpack.c.bf16 %v716_v34, %v715_v13  ;;  %1990 = vmatpush3.bf16.msra.mxu1 %v2540_v62  ;;  %v880_v62 = vld [vmem:[%s3180_s4] sm:$0xff]  ;;  %v882_v13 = vld [vmem:[%s3180_s4 + $0x10] sm:$0xff]  ;;  %2064 = vmatprep.subr.bf16.mxu0 %v2063_v21 }
 0x175   :  { %v1991_v37 = vpack.c.bf16 %v714_v35, %v713_v10  ;;  %v886_v34 = vld [vmem:[%s3180_s4 + $0x30] sm:$0xff]  ;;  %v891_v35 = vld [vmem:[%s3180_s4 + $0x58] sm:$0xff] }
 0x176   :  { %v2033_v49 = vpack.c.bf16 %v886_v34, %v882_v13 }
 0x177   :  { %1992 = vmatprep.subr.bf16.mxu1 %v1991_v37 }
 0x178   :  { %1994 = vmatpush3.bf16.msra.mxu1 %v2550_v38  ;;  %v884_v38 = vld [vmem:[%s3180_s4 + $0x20] sm:$0xff] }
 0x179   :  { %1996 = vmatprep.subr.bf16.mxu1 %v1995_v36  ;;  %v2001_v42 = vpack.c.bf16 %v884_v38, %v880_v62  ;;  %v895_v36 = vld [vmem:[%s3180_s4 + $0x78] sm:$0xff]  ;;  %v894_v38 = vld [vmem:[%s3180_s4 + $0x70] sm:$0xff] }
 0x17a   :  { %v2035_v62 = vpack.c.bf16 %v895_v36, %v891_v35  ;;  %v1133_v35 = vld [vmem:[%s3182_s6 + $0x28] sm:$0xff]  ;;  %v1150_v36 = vld [vmem:[%s3182_s6 + $0xb0] sm:$0xff] }
 0x17c   :  { %1998 = vmatpush3.bf16.msra.mxu1 %v2548_v12  ;;  %v893_v12 = vld [vmem:[%s3180_s4 + $0x68] sm:$0xff] }
 0x17d   :  { %2000 = vmatprep.subr.bf16.mxu1 %v1999_v39  ;;  %v890_v39 = vld [vmem:[%s3180_s4 + $0x50] sm:$0xff] }
 0x17f   :  { %875 = vmatmul.mubr.f32.vlgmr.msra.gmra.mrb[2].mxu1 %v2517_v55  ;;  %v889_v55 = vld [vmem:[%s3180_s4 + $0x48] sm:$0xff] }
 0x180   :  { %v2003_v43 = vpack.c.bf16 %v893_v12, %v889_v55  ;;  %2002 = vmatpush1.bf16.msra.mxu1 %v2001_v42  ;;  %1030 = vmatprep.mubr.f32.mxu1 %v2256_v30  ;;  %v899_v55 = vld [vmem:[%s3180_s4 + $0x98] sm:$0xff]  ;;  %v2037_v42 = vpack.c.bf16 %v894_v38, %v890_v39  ;;  %v1152_v39 = vld [vmem:[%s3182_s6 + $0xc0] sm:$0xff] }
 0x181   :  { %v903_v12 = vld [vmem:[%s3180_s4 + $0xb8] sm:$0xff] }
 0x182   :  { %2004 = vmatprep.subr.bf16.mxu1 %v2003_v43  ;;  %v2039_v43 = vpack.c.bf16 %v903_v12, %v899_v55  ;;  %v1153_v55 = vld [vmem:[%s3182_s6 + $0xc8] sm:$0xff]  ;;  %v1176_v12 = vld [vmem:[%s3182_s6 + $0x180] sm:$0xff] }
 0x184   :  { %2006 = vmatpush1.bf16.msra.mxu1 %v2005_v52  ;;  %v2041_v52 = vpack.c.bf16 %v902_v50, %v898_v48  ;;  %v1160_v48 = vld [vmem:[%s3182_s6 + $0x100] sm:$0xff]  ;;  %v1161_v50 = vld [vmem:[%s3182_s6 + $0x108] sm:$0xff] }
 0x185   :  { %2008 = vmatprep.subr.bf16.mxu1 %v2007_v53  ;;  %v2043_v53 = vpack.c.bf16 %v911_v27, %v907_v51  ;;  %v1178_v51 = vld [vmem:[%s3182_s6 + $0x190] sm:$0xff]  ;;  %v2097_v27 = vpack.c.bf16 %v1161_v50, %v1160_v48 }
 0x188   :  { %2010 = vmatpush1.bf16.msra.mxu1 %v2009_v57  ;;  %v2045_v57 = vpack.c.bf16 %v910_v26, %v906_v54  ;;  %v1163_v54 = vld [vmem:[%s3182_s6 + $0x118] sm:$0xff] }
 0x189   :  { %2012 = vmatprep.subr.bf16.mxu1 %v2011_v58  ;;  %v2047_v58 = vpack.c.bf16 %v919_v56, %v915_v46  ;;  %v1180_v56 = vld [vmem:[%s3182_s6 + $0x1a0] sm:$0xff] }
 0x18c   :  { %2014 = vmatpush1.bf16.msra.mxu1 %v2013_v2  ;;  %v2049_v2 = vpack.c.bf16 %v918_v41, %v914_v60  ;;  %v1136_v60 = vld [vmem:[%s3182_s6 + $0x40] sm:$0xff]  ;;  %v1137_v41 = vld [vmem:[%s3182_s6 + $0x48] sm:$0xff] }
 0x18d   :  { %2016 = vmatprep.subr.bf16.mxu1 %v2015_v3  ;;  %v2051_v3 = vpack.c.bf16 %v927_v1, %v923_v63  ;;  %v1154_v63 = vld [vmem:[%s3182_s6 + $0xd0] sm:$0xff] }
 0x190   :  { %2018 = vmatpush1.bf16.msra.mxu1 %v2017_v7  ;;  %v2053_v7 = vpack.c.bf16 %v926_v5, %v922_v4  ;;  %v1164_v4 = vld [vmem:[%s3182_s6 + $0x120] sm:$0xff]  ;;  %v1165_v5 = vld [vmem:[%s3182_s6 + $0x128] sm:$0xff] }
 0x191   :  { %2020 = vmatprep.subr.bf16.mxu1 %v2019_v8  ;;  %v2055_v8 = vpack.c.bf16 %v935_v6, %v931_v40  ;;  %v1182_v40 = vld [vmem:[%s3182_s6 + $0x1b0] sm:$0xff]  ;;  %v1183_v6 = vld [vmem:[%s3182_s6 + $0x1b8] sm:$0xff] }
 0x194   :  { %2022 = vmatpush1.bf16.msra.mxu1 %v2021_v47  ;;  %v2057_v47 = vpack.c.bf16 %v934_v14, %v930_v9  ;;  %v1138_v9 = vld [vmem:[%s3182_s6 + $0x50] sm:$0xff]  ;;  %v1139_v14 = vld [vmem:[%s3182_s6 + $0x58] sm:$0xff] }
 0x195   :  { %2024 = vmatprep.subr.bf16.mxu1 %v2023_v17  ;;  %v2059_v17 = vpack.c.bf16 %v943_v16, %v939_v15  ;;  %v1156_v15 = vld [vmem:[%s3182_s6 + $0xe0] sm:$0xff]  ;;  %v2105_v16 = vpack.c.bf16 %v1165_v5, %v1164_v4  ;;  %v1143_v4 = vld [vmem:[%s3182_s6 + $0x78] sm:$0xff]  ;;  %v1170_v5 = vld [vmem:[%s3182_s6 + $0x150] sm:$0xff] }
 0x198   :  { %2026 = vmatpush1.bf16.msra.mxu1 %v2025_v19  ;;  %v2061_v19 = vpack.c.bf16 %v942_v18, %v938_v61  ;;  %v1166_v61 = vld [vmem:[%s3182_s6 + $0x130] sm:$0xff]  ;;  %v1167_v18 = vld [vmem:[%s3182_s6 + $0x138] sm:$0xff] }
 0x199   :  { %2028 = vmatprep.subr.bf16.mxu1 %v2027_v59  ;;  %v1128_v59 = vld [vmem:[%s3182_s6] sm:$0xff]  ;;  %v2109_v21 = vpack.c.bf16 %v1167_v18, %v1166_v61 }
 0x19a   :  { %v2065_v28 = vpack.c.bf16 %v1129_v22, %v1128_v59  ;;  %v1141_v59 = vld [vmem:[%s3182_s6 + $0x68] sm:$0xff] }
 0x19b   :  { %v2089_v22 = vpack.c.bf16 %v1141_v59, %v1140_v20  ;;  %v1341_v59 = vld [vmem:[%s3184_s8 + $0x8] sm:$0xff] }
 0x19c   :  { %2030 = vmatpush1.bf16.msra.mxu1 %v2029_v23  ;;  %v1146_v23 = vld [vmem:[%s3182_s6 + $0x90] sm:$0xff]  ;;  %2066 = vmatpush3.bf16.msra.mxu0 %v2065_v28  ;;  %v948_v28 = vsub.s32 0, %v2435_v44 }
 0x19d   :  { %2032 = vmatprep.subr.bf16.mxu1 %v2031_v29  ;;  %v2067_v29 = vpack.c.bf16 %v1147_v25, %v1146_v23 }
 0x19f   :  { %2068 = vmatprep.subr.bf16.mxu0 %v2067_v29  ;;  %v952_v29 = vsub.s32 1, %v2435_v44 }
 0x212   :  { %v1695_v31 = vpop.f32.mrb[0].mxu1 }
 0x213   :  { %v1696_v11 = vpop.f32.mrb[1].mxu1 }
 0x214   :  { %v1697_v32 = vadd.f32 %v1696_v11, %v1695_v31  ;;  %v1130_v31 = vld [vmem:[%s3182_s6 + $0x10] sm:$0xff]  ;;  %v1131_v11 = vld [vmem:[%s3182_s6 + $0x18] sm:$0xff] }
 0x215   :  { %v2069_v13 = vpack.c.bf16 %v1131_v11, %v1130_v31  ;;  %v944_v31 = vld [vmem:[%s3181_s5] sm:$0xf] }
 0x216   :  { %v949_v11 = vrot.slane %v944_v31, %v948_v28 }
 0x217   :  { %2070 = vmatpush3.bf16.msra.mxu0 %v2069_v13 }
 0x252   :  { %v1730_v33 = vpop.f32.mrb[2].mxu1 }
 0x253   :  { %v1731_v10 = vpop.f32.mrb[3].mxu1 }
 0x254   :  { %v1732_v37 = vadd.f32 %v1731_v10, %v1730_v33  ;;  %v1149_v33 = vld [vmem:[%s3182_s6 + $0xa8] sm:$0xff]  ;;  %v1132_v10 = vld [vmem:[%s3182_s6 + $0x20] sm:$0xff] }
 0x256   :  { %v877_v24 = vadd.f32 %v1732_v37, %v1697_v32  ;;  %v1148_v32 = vld [vmem:[%s3182_s6 + $0xa0] sm:$0xff]  ;;  %v1151_v37 = vld [vmem:[%s3182_s6 + $0xb8] sm:$0xff] }
 0x257   :  { %v2071_v34 = vpack.c.bf16 %v1149_v33, %v1148_v32  ;;  %v2075_v38 = vpack.c.bf16 %v1151_v37, %v1150_v36  ;;  %v953_v32 = vrot.slane %v944_v31, %v952_v29 }
 0x258   :  { %1031 = vmatmul.mubr.f32.vlgmr.msra.gmra.mrb[4].mxu1 %v877_v24 }
 0x259   :  { %2034 = vmatpush1.bf16.msra.mxu1 %v2033_v49  ;;  %1101 = vmatprep.mubr.f32.mxu1 %v2256_v30  ;;  %v2073_v49 = vpack.c.bf16 %v1133_v35, %v1132_v10  ;;  %v960_v10 = vsub.s32 3, %v2435_v44 }
 0x25a   :  { %2036 = vmatprep.subr.bf16.mxu1 %v2035_v62  ;;  %v1135_v62 = vld [vmem:[%s3182_s6 + $0x38] sm:$0xff]  ;;  %2072 = vmatprep.subr.bf16.mxu0 %v2071_v34  ;;  %v956_v34 = vsub.s32 2, %v2435_v44 }
 0x25b   :  { %2074 = vmatpush3.bf16.msra.mxu0 %v2073_v49  ;;  %v961_v49 = vrot.slane %v944_v31, %v960_v10  ;;  %v1342_v10 = vld [vmem:[%s3184_s8 + $0x10] sm:$0xff] }
 0x25c   :  { %2076 = vmatprep.subr.bf16.mxu0 %v2075_v38  ;;  %v957_v37 = vrot.slane %v944_v31, %v956_v34 }
 0x25d   :  { %2038 = vmatpush1.bf16.msra.mxu1 %v2037_v42  ;;  %v1177_v42 = vld [vmem:[%s3182_s6 + $0x188] sm:$0xff] }
 0x25e   :  { %2040 = vmatprep.subr.bf16.mxu1 %v2039_v43  ;;  %v2095_v43 = vpack.c.bf16 %v1177_v42, %v1176_v12 }
 0x261   :  { %2042 = vmatpush1.bf16.msra.mxu1 %v2041_v52  ;;  %v1179_v52 = vld [vmem:[%s3182_s6 + $0x198] sm:$0xff] }
 0x262   :  { %2044 = vmatprep.subr.bf16.mxu1 %v2043_v53  ;;  %v1162_v53 = vld [vmem:[%s3182_s6 + $0x110] sm:$0xff]  ;;  %v2099_v46 = vpack.c.bf16 %v1179_v52, %v1178_v51 }
 0x263   :  { %v2101_v1 = vpack.c.bf16 %v1163_v54, %v1162_v53  ;;  %v1184_v53 = vld [vmem:[%s3182_s6 + $0x1c0] sm:$0xff]  ;;  %v1185_v54 = vld [vmem:[%s3182_s6 + $0x1c8] sm:$0xff] }
 0x265   :  { %2046 = vmatpush1.bf16.msra.mxu1 %v2045_v57  ;;  %v1181_v57 = vld [vmem:[%s3182_s6 + $0x1a8] sm:$0xff] }
 0x266   :  { %2048 = vmatprep.subr.bf16.mxu1 %v2047_v58  ;;  %v2079_v58 = vpack.c.bf16 %v1153_v55, %v1152_v39 }
 0x269   :  { %2050 = vmatpush1.bf16.msra.mxu1 %v2049_v2  ;;  %v1155_v2 = vld [vmem:[%s3182_s6 + $0xd8] sm:$0xff] }
 0x26a   :  { %2052 = vmatprep.subr.bf16.mxu1 %v2051_v3  ;;  %v2103_v3 = vpack.c.bf16 %v1181_v57, %v1180_v56  ;;  %v1169_v56 = vld [vmem:[%s3182_s6 + $0x148] sm:$0xff] }
 0x26d   :  { %2054 = vmatpush1.bf16.msra.mxu1 %v2053_v7  ;;  %v2081_v7 = vpack.c.bf16 %v1137_v41, %v1136_v60  ;;  %v1187_v60 = vld [vmem:[%s3182_s6 + $0x1d8] sm:$0xff]  ;;  %v1158_v41 = vld [vmem:[%s3182_s6 + $0xf0] sm:$0xff] }
 0x26e   :  { %2056 = vmatprep.subr.bf16.mxu1 %v2055_v8  ;;  %v2083_v8 = vpack.c.bf16 %v1155_v2, %v1154_v63  ;;  %v1159_v63 = vld [vmem:[%s3182_s6 + $0xf8] sm:$0xff] }
 0x271   :  { %2058 = vmatpush1.bf16.msra.mxu1 %v2057_v47  ;;  %v1157_v47 = vld [vmem:[%s3182_s6 + $0xe8] sm:$0xff] }
 0x272   :  { %2060 = vmatprep.subr.bf16.mxu1 %v2059_v17  ;;  %v2107_v17 = vpack.c.bf16 %v1183_v6, %v1182_v40  ;;  %v2087_v0 = vpack.c.bf16 %v1157_v47, %v1156_v15  ;;  %v1171_v40 = vld [vmem:[%s3182_s6 + $0x158] sm:$0xff]  ;;  %v1190_v47 = vld [vmem:[%s3182_s6 + $0x1f0] sm:$0xff] }
 0x275   :  { %2062 = vmatpush1.bf16.msra.mxu1 %v2061_v19  ;;  %v2085_v19 = vpack.c.bf16 %v1139_v14, %v1138_v9  ;;  %v1189_v9 = vld [vmem:[%s3182_s6 + $0x1e8] sm:$0xff]  ;;  %v1172_v14 = vld [vmem:[%s3182_s6 + $0x160] sm:$0xff] }
 0x276   :  { %2096 = vmatprep.subr.bf16.mxu1 %v2095_v43 }
 0x278   :  { %1102 = vmatmul.mubr.f32.vlgmr.msra.gmra.mrb[6].mxu1 %v877_v24  ;;  %v1134_v24 = vld [vmem:[%s3182_s6 + $0x30] sm:$0xff] }
 0x279   :  { %v2077_v26 = vpack.c.bf16 %v1135_v62, %v1134_v24  ;;  %2098 = vmatpush3.bf16.msra.mxu1 %v2097_v27 }
 0x27a   :  { %2100 = vmatprep.subr.bf16.mxu1 %v2099_v46  ;;  %v1168_v46 = vld [vmem:[%s3182_s6 + $0x140] sm:$0xff] }
 0x27b   :  { %2078 = vmatpush3.bf16.msra.mxu0 %v2077_v26  ;;  %v2111_v26 = vpack.c.bf16 %v1185_v54, %v1184_v53  ;;  %v2113_v57 = vpack.c.bf16 %v1169_v56, %v1168_v46  ;;  %v1352_v53 = vld [vmem:[%s3184_s8 + $0x60] sm:$0xff]  ;;  %v1354_v46 = vld [vmem:[%s3184_s8 + $0x70] sm:$0xff]  ;;  %v1357_v56 = vld [vmem:[%s3184_s8 + $0x88] sm:$0xff] }
 0x27c   :  { %2080 = vmatprep.subr.bf16.mxu0 %v2079_v58  ;;  %v1186_v58 = vld [vmem:[%s3182_s6 + $0x1d0] sm:$0xff] }
 0x27d   :  { %2102 = vmatpush3.bf16.msra.mxu1 %v2101_v1  ;;  %v1142_v1 = vld [vmem:[%s3182_s6 + $0x70] sm:$0xff]  ;;  %v2115_v2 = vpack.c.bf16 %v1187_v60, %v1186_v58 }
 0x27e   :  { %2104 = vmatprep.subr.bf16.mxu1 %v2103_v3  ;;  %v2091_v3 = vpack.c.bf16 %v1159_v63, %v1158_v41  ;;  %v2093_v6 = vpack.c.bf16 %v1143_v4, %v1142_v1  ;;  %v1362_v58 = vld [vmem:[%s3184_s8 + $0xb0] sm:$0xff]  ;;  %v2166_v41 = vpack.c.bf16 %v1357_v56, %v1354_v46  ;;  %v1363_v4 = vld [vmem:[%s3184_s8 + $0xb8] sm:$0xff]  ;;  %v1388_v56 = vld [vmem:[%s3185_s9] sm:$0x7] }
 0x27f   :  { %2082 = vmatpush3.bf16.msra.mxu0 %v2081_v7  ;;  %v2117_v7 = vpack.c.bf16 %v1171_v40, %v1170_v5  ;;  %v1358_v63 = vld [vmem:[%s3184_s8 + $0x90] sm:$0xff]  ;;  %v1365_v5 = vld [vmem:[%s3184_s8 + $0xc8] sm:$0xff]  ;;  %v1368_v40 = vld [vmem:[%s3184_s8 + $0xe0] sm:$0xff] }
 0x280   :  { %2084 = vmatprep.subr.bf16.mxu0 %v2083_v8  ;;  %v1188_v8 = vld [vmem:[%s3182_s6 + $0x1e0] sm:$0xff] }
 0x281   :  { %2106 = vmatpush3.bf16.msra.mxu1 %v2105_v16  ;;  %v2119_v15 = vpack.c.bf16 %v1189_v9, %v1188_v8  ;;  %v1173_v16 = vld [vmem:[%s3182_s6 + $0x168] sm:$0xff]  ;;  %v1364_v8 = vld [vmem:[%s3184_s8 + $0xc0] sm:$0xff]  ;;  %v2143_v9 = vpack.c.bf16 %v1368_v40, %v1365_v5 }
 0x282   :  { %2108 = vmatprep.subr.bf16.mxu1 %v2107_v17  ;;  %v1191_v17 = vld [vmem:[%s3182_s6 + $0x1f8] sm:$0xff]  ;;  %v2121_v61 = vpack.c.bf16 %v1173_v16, %v1172_v14  ;;  %v1369_v16 = vld [vmem:[%s3184_s8 + $0xe8] sm:$0xff] }
 0x283   :  { %2086 = vmatpush3.bf16.msra.mxu0 %v2085_v19  ;;  %v2123_v18 = vpack.c.bf16 %v1191_v17, %v1190_v47  ;;  %v1174_v19 = vld [vmem:[%s3182_s6 + $0x170] sm:$0xff]  ;;  %v1367_v14 = vld [vmem:[%s3184_s8 + $0xd8] sm:$0xff] }
 0x284   :  { %2088 = vmatprep.subr.bf16.mxu0 %v2087_v0  ;;  %v1175_v0 = vld [vmem:[%s3182_s6 + $0x178] sm:$0xff]  ;;  %v1374_v17 = vld [vmem:[%s3184_s8 + $0x110] sm:$0xff] }
 0x285   :  { %2110 = vmatpush3.bf16.msra.mxu1 %v2109_v21  ;;  %v2125_v20 = vpack.c.bf16 %v1175_v0, %v1174_v19  ;;  %v1344_v21 = vld [vmem:[%s3184_s8 + $0x20] sm:$0xff]  ;;  %v1371_v47 = vld [vmem:[%s3184_s8 + $0xf8] sm:$0xff]  ;;  %v1370_v19 = vld [vmem:[%s3184_s8 + $0xf0] sm:$0xff] }
 0x286   :  { %2112 = vmatprep.subr.bf16.mxu1 %v2111_v26  ;;  %v1355_v26 = vld [vmem:[%s3184_s8 + $0x78] sm:$0xff]  ;;  %v2147_v0 = vpack.c.bf16 %v1374_v17, %v1371_v47 }
 0x287   :  { %2090 = vmatpush3.bf16.msra.mxu0 %v2089_v22  ;;  %v2127_v22 = vpack.c.bf16 %v1344_v21, %v1341_v59  ;;  %v2137_v60 = vpack.c.bf16 %v1355_v26, %v1352_v53  ;;  %v1372_v59 = vld [vmem:[%s3184_s8 + $0x100] sm:$0xff]  ;;  %v1375_v21 = vld [vmem:[%s3184_s8 + $0x118] sm:$0xff] }
 0x288   :  { %2092 = vmatprep.subr.bf16.mxu0 %v2091_v3  ;;  %v1360_v3 = vld [vmem:[%s3184_s8 + $0xa0] sm:$0xff] }
 0x289   :  { %2114 = vmatpush3.bf16.msra.mxu1 %v2113_v57  ;;  %v1359_v57 = vld [vmem:[%s3184_s8 + $0x98] sm:$0xff] }
 0x28a   :  { %2116 = vmatprep.subr.bf16.mxu1 %v2115_v2  ;;  %v2139_v1 = vpack.c.bf16 %v1362_v58, %v1359_v57  ;;  %v1361_v2 = vld [vmem:[%s3184_s8 + $0xa8] sm:$0xff]  ;;  %v1401_v57 = vrot.slane %v1388_v56, %v956_v34  ;;  %v1397_v58 = vrot.slane %v1388_v56, %v952_v29 }
 0x28b   :  { %2094 = vmatpush3.bf16.msra.mxu0 %v2093_v6  ;;  %v2141_v6 = vpack.c.bf16 %v1361_v2, %v1358_v63 }
 0x28c   :  { %2128 = vmatprep.subr.bf16.mxu0 %v2127_v22 }
 0x28d   :  { %2118 = vmatpush3.bf16.msra.mxu1 %v2117_v7  ;;  %v2169_v7 = vpack.c.bf16 %v1363_v4, %v1360_v3 }
 0x28e   :  { %2120 = vmatprep.subr.bf16.mxu1 %v2119_v15  ;;  %v1366_v15 = vld [vmem:[%s3184_s8 + $0xd0] sm:$0xff] }
 0x291   :  { %2122 = vmatpush3.bf16.msra.mxu1 %v2121_v61  ;;  %v2145_v61 = vpack.c.bf16 %v1367_v14, %v1364_v8 }
 0x292   :  { %2124 = vmatprep.subr.bf16.mxu1 %v2123_v18  ;;  %v2172_v18 = vpack.c.bf16 %v1369_v16, %v1366_v15 }
 0x295   :  { %2126 = vmatpush3.bf16.msra.mxu1 %v2125_v20  ;;  %v1373_v20 = vld [vmem:[%s3184_s8 + $0x108] sm:$0xff] }
 0x296   :  { %v2149_v22 = vpack.c.bf16 %v1373_v20, %v1370_v19 }
 0x32b   :  { %v1032_v23 = vpop.f32.mrb[4].mxu1 }
 0x32c   :  { %v1034_v25 = vpop.f32.mrb[5].mxu1  ;;  %v2912_v33 = vadd.f32 %v1032_v23, %v949_v11  ;;  %v2257_v23 = vmov 0.0|0.0   ;;  %v1340_v11 = vld [vmem:[%s3184_s8] sm:$0xff] }
 0x32d   :  { %v2914_v13 = vadd.f32 %v1034_v25, %v953_v32  ;;  %2159 = vmatprep.subr.bf16.mxu1 %v2257_v23  ;;  %v1343_v32 = vld [vmem:[%s3184_s8 + $0x18] sm:$0xff] }
 0x32e   :  { %v1108_v35 = vmul.f32 %v2912_v33, %v2912_v33 }
 0x32f   :  { %v1109_v36 = vmul.f32 %v2914_v13, %v2914_v13 }
 0x330   :  { %v1113_v62 = vsel %vm1112_vm0, %v1108_v35, 0.0  ;;  %v1345_v35 = vld [vmem:[%s3184_s8 + $0x28] sm:$0xff] }
 0x331   :  { %v1114_v39 = vsel %vm1112_vm0, %v1109_v36, 0.0  ;;  %v1347_v36 = vld [vmem:[%s3184_s8 + $0x38] sm:$0xff] }
 0x332   :  { %v1115_v48 = vadd.f32 %v1114_v39, %v1113_v62  ;;  %v2160_v62 = vpack.c.bf16 %v1345_v35, %v1342_v10  ;;  %v1376_v10 = vld [vmem:[%s3184_s8 + $0x120] sm:$0xff]  ;;  %v1379_v35 = vld [vmem:[%s3184_s8 + $0x138] sm:$0xff] }
 0x34b   :  { %v1103_v24 = vpop.f32.mrb[6].mxu1 }
 0x34c   :  { %v2924_v38 = vadd.f32 %v1103_v24, %v957_v37  ;;  %v1105_v55 = vpop.f32.mrb[7].mxu1  ;;  %v1350_v37 = vld [vmem:[%s3184_s8 + $0x50] sm:$0xff]  ;;  %v2129_v24 = vpack.c.bf16 %v1343_v32, %v1340_v11  ;;  %v1380_v11 = vld [vmem:[%s3184_s8 + $0x140] sm:$0xff] }
 0x34d   :  { %v2926_v12 = vadd.f32 %v1105_v55, %v961_v49 }
 0x34e   :  { %v1110_v42 = vmul.f32 %v2924_v38, %v2924_v38 }
 0x34f   :  { %v1111_v43 = vmul.f32 %v2926_v12, %v2926_v12 }
 0x350   :  { %v1116_v50 = vsel %vm1112_vm0, %v1110_v42, 0.0 }
 0x351   :  { %v1117_v51 = vadd.f32 %v1116_v50, %v1115_v48  ;;  %v1118_v27 = vsel %vm1112_vm0, %v1111_v43, 0.0  ;;  %v1346_v48 = vld [vmem:[%s3184_s8 + $0x30] sm:$0xff]  ;;  %v2131_v50 = vpack.c.bf16 %v1350_v37, %v1347_v36  ;;  %v2153_v36 = vpack.c.bf16 %v1379_v35, %v1376_v10 }
 0x352   :  { %v1378_v37 = vld [vmem:[%s3184_s8 + $0x130] sm:$0xff] }
 0x353   :  { %v1119_v52 = vadd.f32 %v1118_v27, %v1117_v51  ;;  %v1349_v51 = vld [vmem:[%s3184_s8 + $0x48] sm:$0xff]  ;;  %v1348_v27 = vld [vmem:[%s3184_s8 + $0x40] sm:$0xff] }
 0x355   :  { %1120 = vadd.xlane.f32.xlu0 %v1119_v52 }
 0x3e2   :  { %v1121_v25 = vpop.xlane.xlu0 %1120 }
 0x3e3   :  { %v1122_v31 = vadd.f32 1e-08, %v1121_v25  ;;  %v2175_v25 = vpack.c.bf16 %v1375_v21, %v1372_v59 }
 0x3e5   :  { %2229 = vrsqrt.f32 %v1122_v31  ;;  %v1377_v31 = vld [vmem:[%s3184_s8 + $0x128] sm:$0xff] }
 0x3e6   :  { %v2151_v32 = vpack.c.bf16 %v1380_v11, %v1377_v31 }
 0x3ef   :  { %v2230_v49 = vpop.eup %2229 }
 0x3f0   :  { %v1125_v39 = vmul.f32 %v2230_v49, %v2914_v13  ;;  %v1127_v55 = vmul.f32 %v2230_v49, %v2926_v12  ;;  %v1124_v42 = vmul.f32 %v2230_v49, %v2912_v33  ;;  %v1126_v43 = vmul.f32 %v2230_v49, %v2924_v38  ;;  %v1351_v13 = vld [vmem:[%s3184_s8 + $0x58] sm:$0xff]  ;;  %v1353_v33 = vld [vmem:[%s3184_s8 + $0x68] sm:$0xff]  ;;  %v1356_v38 = vld [vmem:[%s3184_s8 + $0x80] sm:$0xff] }
 0x3f1   :  { %v2133_v12 = vpack.c.bf16 %v1349_v51, %v1346_v48  ;;  %v2163_v52 = vpack.c.bf16 %v1351_v13, %v1348_v27  ;;  %v2135_v54 = vpack.c.bf16 %v1356_v38, %v1353_v33  ;;  %v1381_v49 = vld [vmem:[%s3184_s8 + $0x148] sm:$0xff]  ;;  %v1384_v48 = vld [vmem:[%s3184_s8 + $0x160] sm:$0xff]  ;;  %v1387_v51 = vld [vmem:[%s3184_s8 + $0x178] sm:$0xff] }
 0x3f2   :  { %1263 = vmatprep.mubr.f32.mxu0 %v1125_v39  ;;  %1333 = vmatprep.mubr.f32.mxu1 %v1127_v55  ;;  %v1386_v39 = vld [vmem:[%s3184_s8 + $0x170] sm:$0xff]  ;;  %v2181_v27 = vpack.c.bf16 %v1387_v51, %v1384_v48  ;;  %v1622_v38 = vld [vmem:[%s3183_s7] ss:$0 sm:$0xff]  ;;  %s2259_s7 = smov [#allocation2]  }
 0x3f3   :  { %1264 = vmatmul.mubr.f32.vlgmr.msra.gmra.mrb[64].mxu0 %v1124_v42  ;;  %1334 = vmatmul.mubr.f32.vlgmr.msra.gmra.mrb[8].mxu1 %v1126_v43  ;;  %v1382_v42 = vld [vmem:[%s3184_s8 + $0x150] sm:$0xff]  ;;  %v1385_v43 = vld [vmem:[%s3184_s8 + $0x168] sm:$0xff]  ;;  %s1573_s13 = sshll.u32 %s2259_s7, 4  ;;  %s1574_s13 = int_to_ptr.vmem [resolvable:$true] %s1573_s13 }
 0x3f4   :  { %2130 = vmatpush1.bf16.msra.mxu0 %v2129_v24  ;;  %2161 = vmatpush3.bf16.msra.mxu1 %v2160_v62  ;;  %v2178_v24 = vpack.c.bf16 %v1381_v49, %v1378_v37  ;;  %v1383_v62 = vld [vmem:[%s3184_s8 + $0x158] sm:$0xff]  ;;  %s2231_s9 = scalar_lea.vmem %s1574_s13, 96  ;;  %p2236_p1 = scmp.lt.s32.totalorder %s1574_s13, %s1574_s13 }
 0x3f5   :  { %2132 = vmatprep.subr.bf16.mxu0 %v2131_v50  ;;  %2162 = vmatprep.subr.bf16.mxu1 %v2257_v23  ;;  %v2155_v55 = vpack.c.bf16 %v1386_v39, %v1383_v62  ;;  %v2157_v50 = vpack.c.bf16 %v1385_v43, %v1382_v42  ;;  %p2232_p0 = scmp.ne.s32.totalorder %s1574_s13, %s2231_s9  ;;  %p2237_p2 = scmp.lt.s32.totalorder %s2231_s9, %s2231_s9 }
 0x3f6   :  { %1469 = vmatprep.mubr.f32.mxu0 %v2256_v30  ;;  %1932 = vmatprep.mubr.msk.f32.mxu1 %vm2258_vm1, %v2256_v30  ;;  %v1393_v30 = vrot.slane %v1388_v56, %v948_v28 }
 0x3f7   :  { %p2238_p3 = por %p2237_p2, %p2236_p1 }
 0x3f8   :  { %2134 = vmatpush1.bf16.msra.mxu0 %v2133_v12  ;;  %2164 = vmatpush3.bf16.msra.mxu1 %v2163_v52 }
 0x3f9   :  { %2136 = vmatprep.subr.bf16.mxu0 %v2135_v54  ;;  %2165 = vmatprep.subr.bf16.mxu1 %v2257_v23  ;;  %p2239_p4 = pnand %p2238_p3, %p2232_p0 }
 0x3fc   :  { %2138 = vmatpush1.bf16.msra.mxu0 %v2137_v60  ;;  %2167 = vmatpush3.bf16.msra.mxu1 %v2166_v41 }
 0x3fd   :  { %2140 = vmatprep.subr.bf16.mxu0 %v2139_v1  ;;  %2168 = vmatprep.subr.bf16.mxu1 %v2257_v23 }
 0x400   :  { %2142 = vmatpush1.bf16.msra.mxu0 %v2141_v6  ;;  %2170 = vmatpush3.bf16.msra.mxu1 %v2169_v7 }
 0x401   :  { %2144 = vmatprep.subr.bf16.mxu0 %v2143_v9  ;;  %2171 = vmatprep.subr.bf16.mxu1 %v2257_v23 }
 0x404   :  { %2146 = vmatpush1.bf16.msra.mxu0 %v2145_v61  ;;  %2173 = vmatpush3.bf16.msra.mxu1 %v2172_v18 }
 0x405   :  { %2148 = vmatprep.subr.bf16.mxu0 %v2147_v0  ;;  %2174 = vmatprep.subr.bf16.mxu1 %v2257_v23 }
 0x408   :  { %2150 = vmatpush1.bf16.msra.mxu0 %v2149_v22  ;;  %2176 = vmatpush3.bf16.msra.mxu1 %v2175_v25 }
 0x409   :  { %2177 = vmatprep.subr.bf16.mxu1 %v2257_v23  ;;  %2152 = vmatprep.subr.bf16.mxu0 %v2151_v32 }
 0x40c   :  { %2154 = vmatpush1.bf16.msra.mxu0 %v2153_v36  ;;  %2179 = vmatpush3.bf16.msra.mxu1 %v2178_v24 }
 0x40d   :  { %2180 = vmatprep.subr.bf16.mxu1 %v2257_v23  ;;  %2156 = vmatprep.subr.bf16.mxu0 %v2155_v55 }
 0x410   :  { %2158 = vmatpush1.bf16.msra.mxu0 %v2157_v50  ;;  %2182 = vmatpush3.bf16.msra.mxu1 %v2181_v27 }
 0x4c6   :  { %v1765_v13 = vpop.f32.mrb[64].mxu0  ;;  %v1800_v33 = vpop.f32.mrb[8].mxu1 }
 0x4c7   :  { %v1766_v12 = vpop.f32.mrb[65].mxu0  ;;  %v1801_v23 = vpop.f32.mrb[9].mxu1 }
 0x4c8   :  { %v1767_v52 = vadd.f32 %v1766_v12, %v1765_v13  ;;  %v1802_v53 = vadd.f32 %v1801_v23, %v1800_v33 }
 0x4ca   :  { %v1266_v54 = vadd.f32 %v1767_v52, %v1622_v38 }
 0x4cc   :  { %v1336_v26 = vadd.f32 %v1802_v53, %v1266_v54 }
 0x4ce   :  { %v1339_v46 = vmax.f32 %v1336_v26, 0.0 }
 0x4d0   :  { %1470 = vmatmul.mubr.f32.vlgmr.msra.gmra.mrb[66].mxu0 %v1339_v46  ;;  %1933 = vmatmul.mubr.f32.vlgmr.msra.gmra.mrb[10].mxu1 %v1339_v46 }
 0x5a3   :  { %v1471_v60 = vpop.f32.mrb[66].mxu0  ;;  %v1542_v41 = vpop.f32.mrb[10].mxu1 }
 0x5a4   :  { %v1472_v63 = vadd.f32 %v1471_v60, %v1393_v30  ;;  %v1473_v1 = vpop.f32.mrb[67].mxu0  ;;  %v1934_v2 = vpop.f32.mrb[11].mxu1  ;;  %v1543_v3 = vadd.f32 %v1542_v41, %v1401_v57 }
 0x5a5   :  { %v1474_v4 = vadd.f32 %v1473_v1, %v1397_v58 }
 0x5a6   :  { %v1563_v40 = vrot.slane %v1543_v3, %v2438_v45 }
 0x5a7   :  { %v1549_v5 = vcombine.low %v1472_v63, %v1474_v4 }
 0x5a9   :  { %v1556_v28 = vrot.slane %v1549_v5, %v2438_v45 }
 0x5ab   :  { %v1564_v6 = vcombine.low %v1556_v28, %v1563_v40 }
 0x5ad   :  { %1566 = vst [vmem:[#allocation2] sm:$0x3f] %v1564_v6 }
 0x5ae   :  { %2242 = shalt.err (!%p2239_p4)
}
 0x5af   :  { %s2243_s16 = scalar_lea.hbm %s3186_s10, 96 }
 0x5b0   :  { %p2244_p5 = scmp.ne.s32.totalorder %s3186_s10, %s2243_s16  ;;  %p2247_p6 = scmp.lt.u32.totalorder %s2243_s16, %s3186_s10 }
 0x5b2   :  { %p2249_p7 = pnand %p2247_p6, %p2244_p5 }
 0x5b4   :  { %2252 = shalt.err (!%p2249_p7)
}
 0x5b5   :  { %1576 = dma.vmem_to_hbm [thread:$0]  %s1574_s13, 96, %s3186_s10, [#allocation3]  }
 0x5b6   :  { %2253 = dma.done.wait [#allocation3], 96  }
 0x5b7   :  { %2254 = vsyncadd [#allocation3], 4294967200 }
 0x5b8   :  { %1580 = vsyncpa [#allocation3], 1 }

</bundles_post_ra>
